<compile_context>
chip_gen: v6e
topology: v6e:2x2x1
jax: 0.10.0
libtpu: 0.0.40
codegen_flags: <defaults>
</compile_context>

<pallas_src>
import numpy as np
import jax
import jax.numpy as jnp
from jax.experimental import pallas as pl
from jax.experimental.pallas import tpu as pltpu

H = 768        # hidden size fixed by the module (Conv1d(768, 30), Linear(768, 768))
P = 30         # projection dim of proj_t / proj_a
PP = 128       # lane-padded projection dim (multiple of 128)
LN_EPS = 1e-12
NEG_BIG = -1e9  # additive mask for padded key columns


def _round_up(n, m):
    return ((n + m - 1) // m) * m


def _pick_tile(n, candidates):
    for c in candidates:
        if n % c == 0:
            return c
    return n


def _pick_tq(S, S_pad, Hd, budget=44 * 1024 * 1024):
    """Largest q-tile dividing S whose per-grid-step VMEM estimate fits."""
    cands = [c for c in (512, 256, 128, 64, 32, 16, 8) if S % c == 0]
    tq = cands[0] if cands else S

    def est(t):
        fixed = (2 * S_pad * PP * 2 * 2      # text+audio keys (bf16, double-buffered)
                 + S_pad * Hd * 2 * 2        # hidden keys (bf16, double-buffered)
                 + 2 * Hd * Hd * 2           # dense weight (bf16, double-buffered)
                 + 4 * S_pad * 4)            # row mask
        per_q = (t * Hd * 4 * 2              # f32 LN output (double-buffered)
                 + 2 * t * S_pad * 2 * 2     # 2 bf16 att maps (double-buffered)
                 + 8 * t * S_pad * 4         # f32 logits/exp/probs intermediates
                 + 4 * t * Hd * 4)           # f32 fusion/dense intermediates
        return fixed + per_q

    while tq > 8 and tq % 2 == 0 and est(tq) > budget:
        tq //= 2
    return tq


# ---------------------------------------------------------------------------
# Kernel 1: lane-padded text / audio projections (Conv1d(768, 30, k=1)).
# Emits bf16 projections + per-tile f32 sum-of-squares partials of the text
# projection (for the global ||text||_2 norm).
# ---------------------------------------------------------------------------
def _proj_kernel(x_ref, a_ref, wt_ref, wa_ref, t_ref, v_ref, ssq_ref):
    xb = x_ref[...].astype(jnp.bfloat16)
    ab = a_ref[...].astype(jnp.bfloat16)
    # Weights are zero-padded to 128 output columns -> lane-dense matmuls and
    # exactly-zero padding columns in the outputs (no masking needed).
    t32 = jnp.dot(xb, wt_ref[...], preferred_element_type=jnp.float32)
    a32 = jnp.dot(ab, wa_ref[...], preferred_element_type=jnp.float32)
    t_ref[...] = t32.astype(jnp.bfloat16)
    v_ref[...] = a32.astype(jnp.bfloat16)
    # Partial sum of squares (padded columns are exactly zero -> contribute 0).
    ssq_ref[0] = jnp.sum(t32 * t32, axis=0, keepdims=True)


# ---------------------------------------------------------------------------
# Kernel 2: fused attention + dense + LayerNorm, tiled over (batch, q-tile).
# ---------------------------------------------------------------------------
def _fusion_kernel(scal_ref, tk_ref, ak_ref, hk_ref, mrow_ref,
                   wd_ref, bd_ref, lnw_ref, lnb_ref,
                   out_ref, tatt_ref, fatt_ref):
    tq_size = out_ref.shape[1]
    q0 = pl.multiple_of(pl.program_id(1) * tq_size, tq_size)

    scale_t = scal_ref[0]       # 1 / ||text||_2  (== 1 / weights**2)
    tw = scal_ref[1]            # text_weight_1
    aw = scal_ref[2]            # audio_weight_1
    fb = scal_ref[3]            # bias

    dn = (((1,), (1,)), ((), ()))   # contract last dims: (TQ,PP) x (Sp,PP) -> (TQ,Sp)

    # text self-similarity (bf16 operands, f32 accumulation); /weights**2 folded in.
    t_q = tk_ref[0, pl.ds(q0, tq_size), :]
    text_att = jax.lax.dot_general(
        t_q, tk_ref[0], dn, preferred_element_type=jnp.float32) * scale_t
    text_att1 = jnp.maximum(text_att, 0.0)
    tatt_ref[0] = text_att1.astype(tatt_ref.dtype)          # bf16 store

    # audio self-similarity
    a_q = ak_ref[0, pl.ds(q0, tq_size), :]
    audio_att = jnp.maximum(
        jax.lax.dot_general(a_q, ak_ref[0], dn,
                            preferred_element_type=jnp.float32), 0.0)

    fusion_att = tw * text_att1 + aw * audio_att + fb
    fatt_ref[0] = jnp.maximum(fusion_att, 0.0).astype(fatt_ref.dtype)   # bf16 store

    # Masked softmax over keys (padded key columns carry -1e9 in mrow).
    # NOTE: the module's attention_mask_ (transposed mask) is a per-query-row
    # constant inside the softmax and therefore has no effect -> dropped.
    logits = fusion_att + mrow_ref[0]
    m = jnp.max(logits, axis=-1, keepdims=True)
    e = jnp.exp(logits - m)
    probs = e * pl.reciprocal(jnp.sum(e, axis=-1, keepdims=True), approx=True)

    # fusion_data = probs @ hidden_states + hidden_states (residual on q rows).
    h_q = hk_ref[0, pl.ds(q0, tq_size), :].astype(jnp.float32)
    ctx = jnp.dot(probs.astype(jnp.bfloat16), hk_ref[0],
                  preferred_element_type=jnp.float32)
    fusion_data = ctx + h_q

    # dense: Linear(768, 768)
    new = jnp.dot(fusion_data.astype(jnp.bfloat16), wd_ref[...],
                  preferred_element_type=jnp.float32) + bd_ref[...]

    # BertLayerNorm (TF style, eps inside the sqrt) — rsqrt goes to the EUP.
    u = jnp.mean(new, axis=-1, keepdims=True)
    c = new - u
    s = jnp.mean(c * c, axis=-1, keepdims=True)
    out_ref[0] = lnw_ref[...] * (c * jax.lax.rsqrt(s + LN_EPS)) + lnb_ref[...]


def bert_finetun(hidden_states, audio_data, attention_mask, params):
    """Pallas forward of BertFinetun (eval mode).

    Returns (layernorm_output (B,S,H) f32, text_att1 (B,S,S) bf16,
             fusion_att1 (B,S,S) bf16).  The module's final
    `hidden_states_new[:, 0]` pooling is a trivial slice done by the caller.
    """
    B, S, Hd = hidden_states.shape
    M = B * S
    S_pad = _round_up(S, 128)                               # lane-dense keys / att maps
    TQ = _pick_tq(S, S_pad, Hd)
    TM = _pick_tile(M, (2048, 1024, 512, 256, 128, 64, 32, 16, 8))

    f32, bf16 = jnp.float32, jnp.bfloat16
    VMEM_LIMIT = 64 * 1024 * 1024

    # -- Kernel 1: projections, lane-padded to 128 output columns ------------
    wt_pad = jnp.zeros((Hd, PP), bf16).at[:, :P].set(params['proj_t_w'].T.astype(bf16))
    wa_pad = jnp.zeros((Hd, PP), bf16).at[:, :P].set(params['proj_a_w'].T.astype(bf16))
    G = M // TM

    proj_call = pl.pallas_call(
        _proj_kernel,
        out_shape=(jax.ShapeDtypeStruct((M, PP), bf16),
                   jax.ShapeDtypeStruct((M, PP), bf16),
                   jax.ShapeDtypeStruct((G, 1, PP), f32)),
        grid=(G,),
        in_specs=[pl.BlockSpec((TM, Hd), lambda i: (i, 0)),
                  pl.BlockSpec((TM, Hd), lambda i: (i, 0)),
                  pl.BlockSpec((Hd, PP), lambda i: (0, 0)),
                  pl.BlockSpec((Hd, PP), lambda i: (0, 0))],
        out_specs=(pl.BlockSpec((TM, PP), lambda i: (i, 0)),
                   pl.BlockSpec((TM, PP), lambda i: (i, 0)),
                   pl.BlockSpec((1, 1, PP), lambda i: (i, 0, 0))),
        compiler_params=pltpu.CompilerParams(
            dimension_semantics=("parallel",),
            vmem_limit_bytes=VMEM_LIMIT),
    )
    text_bf, aud_bf, ssq_parts = proj_call(
        hidden_states.reshape(M, Hd).astype(f32),
        audio_data.reshape(M, Hd).astype(f32),
        wt_pad, wa_pad)

    # Global norm (tiny reduction over G*128 partials, f32):
    #   weights = sqrt(||text||_2)  =>  text_att = gram / weights**2
    #                                            = gram * rsqrt(sum(text**2))
    scale_t = jax.lax.rsqrt(jnp.sum(ssq_parts))

    # -- Glue: pad keys to S_pad, build row mask & scalar table ---------------
    def pad_keys(x):
        if S_pad == S:
            return x
        return jnp.pad(x, ((0, 0), (0, S_pad - S), (0, 0)))

    text_k = pad_keys(text_bf.reshape(B, S, PP))
    aud_k = pad_keys(aud_bf.reshape(B, S, PP))
    hs_k = pad_keys(hidden_states.astype(bf16))

    mask_row = jnp.squeeze(attention_mask, axis=1).astype(f32)      # (B, 1, S)
    if S_pad != S:
        mask_row = jnp.pad(mask_row, ((0, 0), (0, 0), (0, S_pad - S)),
                           constant_values=NEG_BIG)

    scalars = jnp.concatenate([scale_t.reshape(1),
                               params['text_weight_1'].reshape(1),
                               params['audio_weight_1'].reshape(1),
                               params['fusion_bias'].reshape(1)]).astype(f32)

    wd = params['dense_w'].T.astype(bf16)                 # Linear computes x @ W^T
    bd = params['dense_b'].reshape(1, Hd).astype(f32)
    lnw = params['ln_w'].reshape(1, Hd).astype(f32)
    lnb = params['ln_b'].reshape(1, Hd).astype(f32)

    # -- Kernel 2: fused attention + dense + LayerNorm, grid (B, S // TQ) -----
    smem = pl.BlockSpec(memory_space=pltpu.MemorySpace.SMEM)
    fusion_call = pl.pallas_call(
        _fusion_kernel,
        out_shape=(jax.ShapeDtypeStruct((B, S, Hd), f32),
                   jax.ShapeDtypeStruct((B, S, S_pad), bf16),
                   jax.ShapeDtypeStruct((B, S, S_pad), bf16)),
        grid=(B, S // TQ),
        in_specs=[
            smem,                                                      # scalar table
            pl.BlockSpec((1, S_pad, PP), lambda b, q: (b, 0, 0)),      # text keys
            pl.BlockSpec((1, S_pad, PP), lambda b, q: (b, 0, 0)),      # audio keys
            pl.BlockSpec((1, S_pad, Hd), lambda b, q: (b, 0, 0)),      # hidden keys
            pl.BlockSpec((1, 1, S_pad), lambda b, q: (b, 0, 0)),       # row mask
            pl.BlockSpec((Hd, Hd), lambda b, q: (0, 0)),               # dense W^T
            pl.BlockSpec((1, Hd), lambda b, q: (0, 0)),                # dense bias
            pl.BlockSpec((1, Hd), lambda b, q: (0, 0)),                # LN gamma
            pl.BlockSpec((1, Hd), lambda b, q: (0, 0)),                # LN beta
        ],
        out_specs=(
            pl.BlockSpec((1, TQ, Hd), lambda b, q: (b, q, 0)),
            pl.BlockSpec((1, TQ, S_pad), lambda b, q: (b, q, 0)),
            pl.BlockSpec((1, TQ, S_pad), lambda b, q: (b, q, 0)),
        ),
        compiler_params=pltpu.CompilerParams(
            dimension_semantics=("parallel", "parallel"),
            vmem_limit_bytes=VMEM_LIMIT),
    )
    out, tatt_p, fatt_p = fusion_call(scalars, text_k, aud_k, hs_k,
                                      mask_row, wd, bd, lnw, lnb)
    return out, tatt_p[:, :, :S], fatt_p[:, :, :S]


def reference(hidden_states, audio_data, attention_mask, params):
    """Pure-JAX reference mirroring the PyTorch forward (eval mode)."""
    mask = jnp.squeeze(attention_mask, axis=1)
    mask_t = jnp.transpose(mask, (0, 2, 1))
    text = jnp.einsum('bsh,ph->bsp', hidden_states, params['proj_t_w'])
    w = jnp.sqrt(jnp.linalg.norm(text.reshape(-1), ord=2))
    text = text / w
    aud = jnp.einsum('bsh,ph->bsp', audio_data, params['proj_a_w'])
    text_att1 = jax.nn.relu(jnp.einsum('bqp,bkp->bqk', text, text))
    audio_att = jax.nn.relu(jnp.einsum('bqp,bkp->bqk', aud, aud))
    fusion_att = (params['text_weight_1'] * text_att1
                  + params['audio_weight_1'] * audio_att
                  + params['fusion_bias'])
    fusion_att1 = jax.nn.relu(fusion_att)
    fusion = jax.nn.softmax(fusion_att + mask + mask_t, axis=-1)
    fusion_data = jnp.einsum('bqk,bkh->bqh', fusion, hidden_states) + hidden_states
    new = fusion_data @ params['dense_w'].T + params['dense_b']
    u = new.mean(-1, keepdims=True)
    s = ((new - u) ** 2).mean(-1, keepdims=True)
    out = params['ln_w'] * ((new - u) / jnp.sqrt(s + LN_EPS)) + params['ln_b']
    return out, text_att1, fusion_att1


if __name__ == "__main__":
    B, S = 2, 8
    key = jax.random.PRNGKey(0)
    k_hs, k_au, k_pt, k_pa, k_dw, k_db = jax.random.split(key, 6)

    hidden_states = jax.random.normal(k_hs, (B, S, H), dtype=jnp.float32)
    audio_data = jax.random.normal(k_au, (B, S, H), dtype=jnp.float32)

    # BERT-extended mask (B, 1, 1, S): 0 for valid, -10000 for padded positions.
    valid = jnp.array([[1, 1, 1, 1, 1, 1, 1, 1],
                       [1, 1, 1, 1, 1, 1, 0, 0]], dtype=jnp.float32)
    attention_mask = ((1.0 - valid) * -10000.0)[:, None, None, :]   # (B,1,1,S)

    params = {
        'proj_t_w': 0.02 * jax.random.normal(k_pt, (P, H), dtype=jnp.float32),
        'proj_a_w': 0.02 * jax.random.normal(k_pa, (P, H), dtype=jnp.float32),
        'dense_w': 0.02 * jax.random.normal(k_dw, (H, H), dtype=jnp.float32),
        'dense_b': 0.01 * jax.random.normal(k_db, (H,), dtype=jnp.float32),
        'ln_w': jnp.ones((H,), dtype=jnp.float32),
        'ln_b': jnp.zeros((H,), dtype=jnp.float32),
        'audio_weight_1': jnp.ones((1,), dtype=jnp.float32),
        'text_weight_1': jnp.ones((1,), dtype=jnp.float32),
        'fusion_bias': jnp.zeros((1,), dtype=jnp.float32),
    }

    run = jax.jit(bert_finetun)
    out, text_att1, fusion_att1 = run(hidden_states, audio_data,
                                      attention_mask, params)
    pooled = out[:, 0]   # BertFinetun returns hidden_states_new[:, 0]
    jax.block_until_ready((out, text_att1, fusion_att1, pooled))

    ref_out, ref_t, ref_f = reference(hidden_states, audio_data, attention_mask, params)
    t_f32 = np.asarray(jnp.asarray(text_att1, jnp.float32))
    f_f32 = np.asarray(jnp.asarray(fusion_att1, jnp.float32))
    np.testing.assert_allclose(np.asarray(out), np.asarray(ref_out), rtol=2e-2, atol=2e-2)
    np.testing.assert_allclose(np.asarray(pooled), np.asarray(ref_out[:, 0]),
                               rtol=2e-2, atol=2e-2)
    np.testing.assert_allclose(t_f32, np.asarray(ref_t), rtol=2e-2, atol=2e-2)
    np.testing.assert_allclose(f_f32, np.asarray(ref_f), rtol=2e-2, atol=2e-2)

    print("KERNEL_OK")
</pallas_src>

<mosaic_0001>
module attributes {stable_mosaic.version = 11 : i64} {
  func.func @_proj_kernel(%arg0: i32, %arg1: memref<16x768xf32, #tpu.memory_space<vmem>>, %arg2: memref<16x768xf32, #tpu.memory_space<vmem>>, %arg3: memref<768x128xbf16, #tpu.memory_space<vmem>>, %arg4: memref<768x128xbf16, #tpu.memory_space<vmem>>, %arg5: memref<16x128xbf16, #tpu.memory_space<vmem>>, %arg6: memref<16x128xbf16, #tpu.memory_space<vmem>>, %arg7: memref<1x1x128xf32, #tpu.memory_space<vmem>>) attributes {dimension_semantics = [#tpu.dimension_semantics<parallel>], iteration_bounds = array<i64: 1>, scalar_prefetch = 0 : i64, scratch_operands = 0 : i64, tpu.core_type = #tpu.core_type<tc>, window_params = [{transform_indices = @transform_0, window_bounds = array<i64: 16, 768>}, {transform_indices = @transform_1, window_bounds = array<i64: 16, 768>}, {pipeline_mode = #tpu.pipeline_mode<synchronous>, transform_indices = @transform_2, window_bounds = array<i64: 768, 128>}, {pipeline_mode = #tpu.pipeline_mode<synchronous>, transform_indices = @transform_3, window_bounds = array<i64: 768, 128>}, {transform_indices = @transform_4, window_bounds = array<i64: 16, 128>}, {transform_indices = @transform_5, window_bounds = array<i64: 16, 128>}, {transform_indices = @transform_6, window_bounds = array<i64: 1, 1, 128>}]} {
    %c0 = arith.constant 0 : index
    %c0_0 = arith.constant 0 : index
    %0 = vector.load %arg1[%c0, %c0_0] : memref<16x768xf32, #tpu.memory_space<vmem>>, vector<16x768xf32>
    %1 = arith.truncf %0 : vector<16x768xf32> to vector<16x768xbf16>
    %c0_1 = arith.constant 0 : index
    %c0_2 = arith.constant 0 : index
    %2 = vector.load %arg2[%c0_1, %c0_2] : memref<16x768xf32, #tpu.memory_space<vmem>>, vector<16x768xf32>
    %3 = arith.truncf %2 : vector<16x768xf32> to vector<16x768xbf16>
    %c0_3 = arith.constant 0 : index
    %c0_4 = arith.constant 0 : index
    %4 = vector.load %arg3[%c0_3, %c0_4] : memref<768x128xbf16, #tpu.memory_space<vmem>>, vector<768x128xbf16>
    %cst = arith.constant dense<0.000000e+00> : vector<16x128xf32>
    %5 = tpu.matmul %1, %4, %cst {dimension_numbers = #tpu.dot_dimension_numbers<[1], [0], [0], [1], [0, 0, 1, 1], [], []>} : vector<16x768xbf16>, vector<768x128xbf16>, vector<16x128xf32> -> vector<16x128xf32>
    %c0_5 = arith.constant 0 : index
    %c0_6 = arith.constant 0 : index
    %6 = vector.load %arg4[%c0_5, %c0_6] : memref<768x128xbf16, #tpu.memory_space<vmem>>, vector<768x128xbf16>
    %cst_7 = arith.constant dense<0.000000e+00> : vector<16x128xf32>
    %7 = tpu.matmul %3, %6, %cst_7 {dimension_numbers = #tpu.dot_dimension_numbers<[1], [0], [0], [1], [0, 0, 1, 1], [], []>} : vector<16x768xbf16>, vector<768x128xbf16>, vector<16x128xf32> -> vector<16x128xf32>
    %8 = arith.truncf %5 : vector<16x128xf32> to vector<16x128xbf16>
    %c0_8 = arith.constant 0 : index
    %c0_9 = arith.constant 0 : index
    %9 = vector.load %arg5[%c0_8, %c0_9] : memref<16x128xbf16, #tpu.memory_space<vmem>>, vector<16x128xbf16>
    tpu.vector_store %arg5[%c0_8, %c0_9], %8 {strides = array<i32>} : memref<16x128xbf16, #tpu.memory_space<vmem>>, vector<16x128xbf16>,
    %10 = arith.truncf %7 : vector<16x128xf32> to vector<16x128xbf16>
    %c0_10 = arith.constant 0 : index
    %c0_11 = arith.constant 0 : index
    %11 = vector.load %arg6[%c0_10, %c0_11] : memref<16x128xbf16, #tpu.memory_space<vmem>>, vector<16x128xbf16>
    tpu.vector_store %arg6[%c0_10, %c0_11], %10 {strides = array<i32>} : memref<16x128xbf16, #tpu.memory_space<vmem>>, vector<16x128xbf16>,
    %12 = arith.mulf %5, %5 : vector<16x128xf32>
    %cst_12 = arith.constant dense<0.000000e+00> : vector<128xf32>
    %13 = vector.multi_reduction <add>, %12, %cst_12 [0] : vector<16x128xf32> to vector<128xf32>
    %14 = vector.shape_cast %13 : vector<128xf32> to vector<1x128xf32>
    %c0_13 = arith.constant 0 : index
    %c0_14 = arith.constant 0 : index
    %c0_15 = arith.constant 0 : index
    %15 = vector.load %arg7[%c0_13, %c0_14, %c0_15] : memref<1x1x128xf32, #tpu.memory_space<vmem>>, vector<1x1x128xf32>
    %16 = vector.shape_cast %15 : vector<1x1x128xf32> to vector<1x128xf32>
    %17 = vector.shape_cast %14 : vector<1x128xf32> to vector<1x1x128xf32>
    tpu.vector_store %arg7[%c0_13, %c0_14, %c0_15], %17 {strides = array<i32>} : memref<1x1x128xf32, #tpu.memory_space<vmem>>, vector<1x1x128xf32>,
    return
  }
  func.func @transform_0(%arg0: i32) -> (i32, i32) {
    %c0_i32 = arith.constant 0 : i32
    %c0_i32_0 = arith.constant 0 : i32
    return %arg0, %c0_i32 : i32, i32
  }
  func.func @transform_1(%arg0: i32) -> (i32, i32) {
    %c0_i32 = arith.constant 0 : i32
    %c0_i32_0 = arith.constant 0 : i32
    return %arg0, %c0_i32 : i32, i32
  }
  func.func @transform_2(%arg0: i32) -> (i32, i32) {
    %c0_i32 = arith.constant 0 : i32
    %c0_i32_0 = arith.constant 0 : i32
    %c0_i32_1 = arith.constant 0 : i32
    return %c0_i32, %c0_i32_0 : i32, i32
  }
  func.func @transform_3(%arg0: i32) -> (i32, i32) {
    %c0_i32 = arith.constant 0 : i32
    %c0_i32_0 = arith.constant 0 : i32
    %c0_i32_1 = arith.constant 0 : i32
    return %c0_i32, %c0_i32_0 : i32, i32
  }
  func.func @transform_4(%arg0: i32) -> (i32, i32) {
    %c0_i32 = arith.constant 0 : i32
    %c0_i32_0 = arith.constant 0 : i32
    return %arg0, %c0_i32 : i32, i32
  }
  func.func @transform_5(%arg0: i32) -> (i32, i32) {
    %c0_i32 = arith.constant 0 : i32
    %c0_i32_0 = arith.constant 0 : i32
    return %arg0, %c0_i32 : i32, i32
  }
  func.func @transform_6(%arg0: i32) -> (i32, i32, i32) {
    %c0_i32 = arith.constant 0 : i32
    %c0_i32_0 = arith.constant 0 : i32
    %c0_i32_1 = arith.constant 0 : i32
    return %arg0, %c0_i32, %c0_i32_0 : i32, i32, i32
  }
}

module attributes {stable_mosaic.version = 11 : i64} {
  func.func @_fusion_kernel(%arg0: i32, %arg1: i32, %arg2: memref<4xf32, #tpu.memory_space<smem>>, %arg3: memref<1x128x128xbf16, #tpu.memory_space<vmem>>, %arg4: memref<1x128x128xbf16, #tpu.memory_space<vmem>>, %arg5: memref<1x128x768xbf16, #tpu.memory_space<vmem>>, %arg6: memref<1x1x128xf32, #tpu.memory_space<vmem>>, %arg7: memref<768x768xbf16, #tpu.memory_space<vmem>>, %arg8: memref<1x768xf32, #tpu.memory_space<vmem>>, %arg9: memref<1x768xf32, #tpu.memory_space<vmem>>, %arg10: memref<1x768xf32, #tpu.memory_space<vmem>>, %arg11: memref<1x8x768xf32, #tpu.memory_space<vmem>>, %arg12: memref<1x8x128xbf16, #tpu.memory_space<vmem>>, %arg13: memref<1x8x128xbf16, #tpu.memory_space<vmem>>) attributes {dimension_semantics = [#tpu.dimension_semantics<parallel>, #tpu.dimension_semantics<parallel>], iteration_bounds = array<i64: 2, 1>, scalar_prefetch = 0 : i64, scratch_operands = 0 : i64, tpu.core_type = #tpu.core_type<tc>, window_params = [{transform_indices = @transform_0, window_bounds = array<i64: 4>}, {transform_indices = @transform_1, window_bounds = array<i64: 1, 128, 128>}, {transform_indices = @transform_2, window_bounds = array<i64: 1, 128, 128>}, {transform_indices = @transform_3, window_bounds = array<i64: 1, 128, 768>}, {transform_indices = @transform_4, window_bounds = array<i64: 1, 1, 128>}, {pipeline_mode = #tpu.pipeline_mode<synchronous>, transform_indices = @transform_5, window_bounds = array<i64: 768, 768>}, {pipeline_mode = #tpu.pipeline_mode<synchronous>, transform_indices = @transform_6, window_bounds = array<i64: 1, 768>}, {pipeline_mode = #tpu.pipeline_mode<synchronous>, transform_indices = @transform_7, window_bounds = array<i64: 1, 768>}, {pipeline_mode = #tpu.pipeline_mode<synchronous>, transform_indices = @transform_8, window_bounds = array<i64: 1, 768>}, {transform_indices = @transform_9, window_bounds = array<i64: 1, 8, 768>}, {transform_indices = @transform_10, window_bounds = array<i64: 1, 8, 128>}, {transform_indices = @transform_11, window_bounds = array<i64: 1, 8, 128>}]} {
    %c8_i32 = arith.constant 8 : i32
    %0 = arith.muli %arg1, %c8_i32 : i32
    %1 = tpu.assume_multiple %0, 8 : i32
    %c0 = arith.constant 0 : index
    %2 = memref.load %arg2[%c0] : memref<4xf32, #tpu.memory_space<smem>>
    %c1 = arith.constant 1 : index
    %3 = memref.load %arg2[%c1] : memref<4xf32, #tpu.memory_space<smem>>
    %c2 = arith.constant 2 : index
    %4 = memref.load %arg2[%c2] : memref<4xf32, #tpu.memory_space<smem>>
    %c3 = arith.constant 3 : index
    %5 = memref.load %arg2[%c3] : memref<4xf32, #tpu.memory_space<smem>>
    %c0_0 = arith.constant 0 : index
    %6 = arith.index_cast %1 : i32 to index
    %c0_1 = arith.constant 0 : index
    %7 = vector.load %arg3[%c0_0, %6, %c0_1] : memref<1x128x128xbf16, #tpu.memory_space<vmem>>, vector<1x8x128xbf16>
    %8 = vector.shape_cast %7 : vector<1x8x128xbf16> to vector<8x128xbf16>
    %c0_2 = arith.constant 0 : index
    %c0_3 = arith.constant 0 : index
    %c0_4 = arith.constant 0 : index
    %9 = vector.load %arg3[%c0_2, %c0_3, %c0_4] : memref<1x128x128xbf16, #tpu.memory_space<vmem>>, vector<1x128x128xbf16>
    %10 = vector.shape_cast %9 : vector<1x128x128xbf16> to vector<128x128xbf16>
    %cst = arith.constant dense<0.000000e+00> : vector<8x128xf32>
    %11 = tpu.matmul %8, %10, %cst {dimension_numbers = #tpu.dot_dimension_numbers<[1], [1], [0], [0], [0, 0, 1, 0], [], []>} : vector<8x128xbf16>, vector<128x128xbf16>, vector<8x128xf32> -> vector<8x128xf32>
    %12 = vector.broadcast %2 : f32 to vector<8x128xf32>
    %13 = arith.mulf %11, %12 : vector<8x128xf32>
    %cst_5 = arith.constant 0.000000e+00 : f32
    %14 = vector.broadcast %cst_5 : f32 to vector<8x128xf32>
    %15 = arith.maximumf %13, %14 : vector<8x128xf32>
    %16 = arith.truncf %15 : vector<8x128xf32> to vector<8x128xbf16>
    %c0_6 = arith.constant 0 : index
    %c0_7 = arith.constant 0 : index
    %c0_8 = arith.constant 0 : index
    %17 = vector.load %arg12[%c0_6, %c0_7, %c0_8] : memref<1x8x128xbf16, #tpu.memory_space<vmem>>, vector<1x8x128xbf16>
    %18 = vector.shape_cast %17 : vector<1x8x128xbf16> to vector<8x128xbf16>
    %19 = vector.shape_cast %16 : vector<8x128xbf16> to vector<1x8x128xbf16>
    tpu.vector_store %arg12[%c0_6, %c0_7, %c0_8], %19 {strides = array<i32>} : memref<1x8x128xbf16, #tpu.memory_space<vmem>>, vector<1x8x128xbf16>,
    %c0_9 = arith.constant 0 : index
    %20 = arith.index_cast %1 : i32 to index
    %c0_10 = arith.constant 0 : index
    %21 = vector.load %arg4[%c0_9, %20, %c0_10] : memref<1x128x128xbf16, #tpu.memory_space<vmem>>, vector<1x8x128xbf16>
    %22 = vector.shape_cast %21 : vector<1x8x128xbf16> to vector<8x128xbf16>
    %c0_11 = arith.constant 0 : index
    %c0_12 = arith.constant 0 : index
    %c0_13 = arith.constant 0 : index
    %23 = vector.load %arg4[%c0_11, %c0_12, %c0_13] : memref<1x128x128xbf16, #tpu.memory_space<vmem>>, vector<1x128x128xbf16>
    %24 = vector.shape_cast %23 : vector<1x128x128xbf16> to vector<128x128xbf16>
    %cst_14 = arith.constant dense<0.000000e+00> : vector<8x128xf32>
    %25 = tpu.matmul %22, %24, %cst_14 {dimension_numbers = #tpu.dot_dimension_numbers<[1], [1], [0], [0], [0, 0, 1, 0], [], []>} : vector<8x128xbf16>, vector<128x128xbf16>, vector<8x128xf32> -> vector<8x128xf32>
    %cst_15 = arith.constant 0.000000e+00 : f32
    %26 = vector.broadcast %cst_15 : f32 to vector<8x128xf32>
    %27 = arith.maximumf %25, %26 : vector<8x128xf32>
    %28 = vector.broadcast %3 : f32 to vector<8x128xf32>
    %29 = arith.mulf %28, %15 : vector<8x128xf32>
    %30 = vector.broadcast %4 : f32 to vector<8x128xf32>
    %31 = arith.mulf %30, %27 : vector<8x128xf32>
    %32 = arith.addf %29, %31 : vector<8x128xf32>
    %33 = vector.broadcast %5 : f32 to vector<8x128xf32>
    %34 = arith.addf %32, %33 : vector<8x128xf32>
    %cst_16 = arith.constant 0.000000e+00 : f32
    %35 = vector.broadcast %cst_16 : f32 to vector<8x128xf32>
    %36 = arith.maximumf %34, %35 : vector<8x128xf32>
    %37 = arith.truncf %36 : vector<8x128xf32> to vector<8x128xbf16>
    %c0_17 = arith.constant 0 : index
    %c0_18 = arith.constant 0 : index
    %c0_19 = arith.constant 0 : index
    %38 = vector.load %arg13[%c0_17, %c0_18, %c0_19] : memref<1x8x128xbf16, #tpu.memory_space<vmem>>, vector<1x8x128xbf16>
    %39 = vector.shape_cast %38 : vector<1x8x128xbf16> to vector<8x128xbf16>
    %40 = vector.shape_cast %37 : vector<8x128xbf16> to vector<1x8x128xbf16>
    tpu.vector_store %arg13[%c0_17, %c0_18, %c0_19], %40 {strides = array<i32>} : memref<1x8x128xbf16, #tpu.memory_space<vmem>>, vector<1x8x128xbf16>,
    %c0_20 = arith.constant 0 : index
    %c0_21 = arith.constant 0 : index
    %c0_22 = arith.constant 0 : index
    %41 = vector.load %arg6[%c0_20, %c0_21, %c0_22] : memref<1x1x128xf32, #tpu.memory_space<vmem>>, vector<1x1x128xf32>
    %42 = vector.shape_cast %41 : vector<1x1x128xf32> to vector<1x128xf32>
    %43 = vector.broadcast %42 : vector<1x128xf32> to vector<8x128xf32>
    %44 = arith.addf %34, %43 : vector<8x128xf32>
    %cst_23 = arith.constant dense<0xFF800000> : vector<8xf32>
    %45 = vector.multi_reduction <maximumf>, %44, %cst_23 [1] : vector<8x128xf32> to vector<8xf32>
    %46 = vector.shape_cast %45 : vector<8xf32> to vector<8x1xf32>
    %47 = vector.broadcast %46 : vector<8x1xf32> to vector<8x128xf32>
    %48 = arith.subf %44, %47 : vector<8x128xf32>
    %49 = math.exp %48 : vector<8x128xf32>
    %cst_24 = arith.constant dense<0.000000e+00> : vector<8xf32>
    %50 = vector.multi_reduction <add>, %49, %cst_24 [1] : vector<8x128xf32> to vector<8xf32>
    %51 = vector.shape_cast %50 : vector<8xf32> to vector<8x1xf32>
    %52 = tpu.reciprocal %51 {approx = true} : vector<8x1xf32> -> vector<8x1xf32>
    %53 = vector.broadcast %52 : vector<8x1xf32> to vector<8x128xf32>
    %54 = arith.mulf %49, %53 : vector<8x128xf32>
    %c0_25 = arith.constant 0 : index
    %55 = arith.index_cast %1 : i32 to index
    %c0_26 = arith.constant 0 : index
    %56 = vector.load %arg5[%c0_25, %55, %c0_26] : memref<1x128x768xbf16, #tpu.memory_space<vmem>>, vector<1x8x768xbf16>
    %57 = vector.shape_cast %56 : vector<1x8x768xbf16> to vector<8x768xbf16>
    %58 = arith.extf %57 : vector<8x768xbf16> to vector<8x768xf32>
    %59 = arith.truncf %54 : vector<8x128xf32> to vector<8x128xbf16>
    %c0_27 = arith.constant 0 : index
    %c0_28 = arith.constant 0 : index
    %c0_29 = arith.constant 0 : index
    %60 = vector.load %arg5[%c0_27, %c0_28, %c0_29] : memref<1x128x768xbf16, #tpu.memory_space<vmem>>, vector<1x128x768xbf16>
    %61 = vector.shape_cast %60 : vector<1x128x768xbf16> to vector<128x768xbf16>
    %cst_30 = arith.constant dense<0.000000e+00> : vector<8x768xf32>
    %62 = tpu.matmul %59, %61, %cst_30 {dimension_numbers = #tpu.dot_dimension_numbers<[1], [0], [0], [1], [0, 0, 1, 1], [], []>} : vector<8x128xbf16>, vector<128x768xbf16>, vector<8x768xf32> -> vector<8x768xf32>
    %63 = arith.addf %62, %58 : vector<8x768xf32>
    %64 = arith.truncf %63 : vector<8x768xf32> to vector<8x768xbf16>
    %c0_31 = arith.constant 0 : index
    %c0_32 = arith.constant 0 : index
    %65 = vector.load %arg7[%c0_31, %c0_32] : memref<768x768xbf16, #tpu.memory_space<vmem>>, vector<768x768xbf16>
    %cst_33 = arith.constant dense<0.000000e+00> : vector<8x768xf32>
    %66 = tpu.matmul %64, %65, %cst_33 {dimension_numbers = #tpu.dot_dimension_numbers<[1], [0], [0], [1], [0, 0, 1, 1], [], []>} : vector<8x768xbf16>, vector<768x768xbf16>, vector<8x768xf32> -> vector<8x768xf32>
    %c0_34 = arith.constant 0 : index
    %c0_35 = arith.constant 0 : index
    %67 = vector.load %arg8[%c0_34, %c0_35] : memref<1x768xf32, #tpu.memory_space<vmem>>, vector<1x768xf32>
    %68 = vector.broadcast %67 : vector<1x768xf32> to vector<8x768xf32>
    %69 = arith.addf %66, %68 : vector<8x768xf32>
    %cst_36 = arith.constant dense<0.000000e+00> : vector<8xf32>
    %70 = vector.multi_reduction <add>, %69, %cst_36 [1] : vector<8x768xf32> to vector<8xf32>
    %71 = vector.shape_cast %70 : vector<8xf32> to vector<8x1xf32>
    %cst_37 = arith.constant 7.680000e+02 : f32
    %72 = vector.broadcast %cst_37 : f32 to vector<8x1xf32>
    %73 = arith.divf %71, %72 : vector<8x1xf32>
    %74 = vector.broadcast %73 : vector<8x1xf32> to vector<8x768xf32>
    %75 = arith.subf %69, %74 : vector<8x768xf32>
    %76 = arith.mulf %75, %75 : vector<8x768xf32>
    %cst_38 = arith.constant dense<0.000000e+00> : vector<8xf32>
    %77 = vector.multi_reduction <add>, %76, %cst_38 [1] : vector<8x768xf32> to vector<8xf32>
    %78 = vector.shape_cast %77 : vector<8xf32> to vector<8x1xf32>
    %cst_39 = arith.constant 7.680000e+02 : f32
    %79 = vector.broadcast %cst_39 : f32 to vector<8x1xf32>
    %80 = arith.divf %78, %79 : vector<8x1xf32>
    %c0_40 = arith.constant 0 : index
    %c0_41 = arith.constant 0 : index
    %81 = vector.load %arg9[%c0_40, %c0_41] : memref<1x768xf32, #tpu.memory_space<vmem>>, vector<1x768xf32>
    %cst_42 = arith.constant 9.99999996E-13 : f32
    %82 = vector.broadcast %cst_42 : f32 to vector<8x1xf32>
    %83 = arith.addf %80, %82 : vector<8x1xf32>
    %84 = math.rsqrt %83 : vector<8x1xf32>
    %85 = vector.broadcast %84 : vector<8x1xf32> to vector<8x768xf32>
    %86 = arith.mulf %75, %85 : vector<8x768xf32>
    %87 = vector.broadcast %81 : vector<1x768xf32> to vector<8x768xf32>
    %88 = arith.mulf %87, %86 : vector<8x768xf32>
    %c0_43 = arith.constant 0 : index
    %c0_44 = arith.constant 0 : index
    %89 = vector.load %arg10[%c0_43, %c0_44] : memref<1x768xf32, #tpu.memory_space<vmem>>, vector<1x768xf32>
    %90 = vector.broadcast %89 : vector<1x768xf32> to vector<8x768xf32>
    %91 = arith.addf %88, %90 : vector<8x768xf32>
    %c0_45 = arith.constant 0 : index
    %c0_46 = arith.constant 0 : index
    %c0_47 = arith.constant 0 : index
    %92 = vector.load %arg11[%c0_45, %c0_46, %c0_47] : memref<1x8x768xf32, #tpu.memory_space<vmem>>, vector<1x8x768xf32>
    %93 = vector.shape_cast %92 : vector<1x8x768xf32> to vector<8x768xf32>
    %94 = vector.shape_cast %91 : vector<8x768xf32> to vector<1x8x768xf32>
    tpu.vector_store %arg11[%c0_45, %c0_46, %c0_47], %94 {strides = array<i32>} : memref<1x8x768xf32, #tpu.memory_space<vmem>>, vector<1x8x768xf32>,
    return
  }
  func.func @transform_0(%arg0: i32, %arg1: i32) -> i32 {
    %c0_i32 = arith.constant 0 : i32
    %c0_i32_0 = arith.constant 0 : i32
    return %c0_i32 : i32
  }
  func.func @transform_1(%arg0: i32, %arg1: i32) -> (i32, i32, i32) {
    %c0_i32 = arith.constant 0 : i32
    %c0_i32_0 = arith.constant 0 : i32
    %c0_i32_1 = arith.constant 0 : i32
    return %arg0, %c0_i32, %c0_i32_0 : i32, i32, i32
  }
  func.func @transform_2(%arg0: i32, %arg1: i32) -> (i32, i32, i32) {
    %c0_i32 = arith.constant 0 : i32
    %c0_i32_0 = arith.constant 0 : i32
    %c0_i32_1 = arith.constant 0 : i32
    return %arg0, %c0_i32, %c0_i32_0 : i32, i32, i32
  }
  func.func @transform_3(%arg0: i32, %arg1: i32) -> (i32, i32, i32) {
    %c0_i32 = arith.constant 0 : i32
    %c0_i32_0 = arith.constant 0 : i32
    %c0_i32_1 = arith.constant 0 : i32
    return %arg0, %c0_i32, %c0_i32_0 : i32, i32, i32
  }
  func.func @transform_4(%arg0: i32, %arg1: i32) -> (i32, i32, i32) {
    %c0_i32 = arith.constant 0 : i32
    %c0_i32_0 = arith.constant 0 : i32
    %c0_i32_1 = arith.constant 0 : i32
    return %arg0, %c0_i32, %c0_i32_0 : i32, i32, i32
  }
  func.func @transform_5(%arg0: i32, %arg1: i32) -> (i32, i32) {
    %c0_i32 = arith.constant 0 : i32
    %c0_i32_0 = arith.constant 0 : i32
    %c0_i32_1 = arith.constant 0 : i32
    return %c0_i32, %c0_i32_0 : i32, i32
  }
  func.func @transform_6(%arg0: i32, %arg1: i32) -> (i32, i32) {
    %c0_i32 = arith.constant 0 : i32
    %c0_i32_0 = arith.constant 0 : i32
    %c0_i32_1 = arith.constant 0 : i32
    return %c0_i32, %c0_i32_0 : i32, i32
  }
  func.func @transform_7(%arg0: i32, %arg1: i32) -> (i32, i32) {
    %c0_i32 = arith.constant 0 : i32
    %c0_i32_0 = arith.constant 0 : i32
    %c0_i32_1 = arith.constant 0 : i32
    return %c0_i32, %c0_i32_0 : i32, i32
  }
  func.func @transform_8(%arg0: i32, %arg1: i32) -> (i32, i32) {
    %c0_i32 = arith.constant 0 : i32
    %c0_i32_0 = arith.constant 0 : i32
    %c0_i32_1 = arith.constant 0 : i32
    return %c0_i32, %c0_i32_0 : i32, i32
  }
  func.func @transform_9(%arg0: i32, %arg1: i32) -> (i32, i32, i32) {
    %c0_i32 = arith.constant 0 : i32
    %c0_i32_0 = arith.constant 0 : i32
    return %arg0, %arg1, %c0_i32 : i32, i32, i32
  }
  func.func @transform_10(%arg0: i32, %arg1: i32) -> (i32, i32, i32) {
    %c0_i32 = arith.constant 0 : i32
    %c0_i32_0 = arith.constant 0 : i32
    return %arg0, %arg1, %c0_i32 : i32, i32, i32
  }
  func.func @transform_11(%arg0: i32, %arg1: i32) -> (i32, i32, i32) {
    %c0_i32 = arith.constant 0 : i32
    %c0_i32_0 = arith.constant 0 : i32
    return %arg0, %arg1, %c0_i32 : i32, i32, i32
  }
}

</mosaic_0001>

<bundles_post_ra>
// kernel: bert_finetun.2
= control target key start
LH: loop header
LB: loop body
LE: loop exit
PB: predicated region body
PF: predicated region fallthrough
CT: control target
= control target key end

     0   :  { %12 = vsyncpa [#allocation3], 0  ;;  %s1875_s0 = inlined_call_operand.hbm [shape: f32[16,768], index: 0, kind: input, shape index: {}]   ;;  %s1876_s1 = inlined_call_operand.hbm [shape: f32[16,768], index: 1, kind: input, shape index: {}]   ;;  %s1877_s2 = inlined_call_operand.vmem [shape: bf16[768,128], index: 2, kind: input, shape index: {}]   ;;  %s1878_s3 = inlined_call_operand.vmem [shape: bf16[768,128], index: 3, kind: input, shape index: {}]   ;;  %s1879_s4 = inlined_call_operand.vmem [shape: bf16[16,128], index: 4, kind: output, shape index: {0}]   ;;  %s1880_s5 = inlined_call_operand.vmem [shape: bf16[16,128], index: 5, kind: output, shape index: {1}]   ;;  %s1881_s6 = inlined_call_operand.vmem [shape: f32[1,1,128], index: 6, kind: output, shape index: {2}]  }
   0x1   :  { %13 = vsyncpa [#allocation5], 0  ;;  %s1533_s21 = smov [#allocation2]  }
   0x2   :  { %s19_s22 = sshll.u32 %s1533_s21, 4  ;;  %s20_s22 = int_to_ptr.vmem [resolvable:$true] %s19_s22 }
   0x3   :  { %s1497_s23 = scalar_lea.vmem %s20_s22, 1536  ;;  %p1502_p1 = scmp.lt.s32.totalorder %s20_s22, %s20_s22 }
   0x4   :  { %p1498_p0 = scmp.ne.s32.totalorder %s20_s22, %s1497_s23  ;;  %p1503_p2 = scmp.lt.s32.totalorder %s1497_s23, %s1497_s23 }
   0x6   :  { %p1504_p3 = por %p1503_p2, %p1502_p1 }
   0x8   :  { %p1505_p4 = pnand %p1504_p3, %p1498_p0 }
   0xa   :  { %1508 = shalt.err (!%p1505_p4)
}
   0xb   :  { %s1534_s24 = smov 768   ;;  %s1535_s25 = smov 48  }
   0xc   :  { %25 = dma.hbm_to_vmem [thread:$0]  %s1875_s0, 1536, %s20_s22, [#allocation3], %s1534_s24, %s1534_s24, %s1535_s25  }
   0xd   :  { %s1536_s28 = smov [#allocation4]  }
   0xe   :  { %s31_s29 = sshll.u32 %s1536_s28, 4  ;;  %s32_s29 = int_to_ptr.vmem [resolvable:$true] %s31_s29 }
   0xf   :  { %s1517_s30 = scalar_lea.vmem %s32_s29, 1536  ;;  %p1522_p6 = scmp.lt.s32.totalorder %s32_s29, %s32_s29 }
  0x10   :  { %p1518_p5 = scmp.ne.s32.totalorder %s32_s29, %s1517_s30  ;;  %p1523_p7 = scmp.lt.s32.totalorder %s1517_s30, %s1517_s30 }
  0x12   :  { %p1524_p8 = por %p1523_p7, %p1522_p6 }
  0x14   :  { %p1525_p9 = pnand %p1524_p8, %p1518_p5 }
  0x16   :  { %1528 = shalt.err (!%p1525_p9)
}
  0x17   :  { %37 = dma.hbm_to_vmem [thread:$0]  %s1876_s1, 1536, %s32_s29, [#allocation5], %s1534_s24, %s1534_s24, %s1535_s25  }
  0x18   :  { %1529 = dma.done.wait [#allocation3], 1536  }
  0x19   :  { %1530 = vsyncadd [#allocation3], 4294965760 }
  0x1a   :  { %1531 = dma.done.wait [#allocation5], 1536  }
  0x1b   :  { %1532 = vsyncadd [#allocation5], 4294965760  ;;  %v1393_v0 = vld [vmem:[%s1877_s2 + $0x78] sm:$0xff]   ;;  %v1397_v4 = vld [vmem:[%s1877_s2 + $0x70] sm:$0xff]  }
  0x1c   :  { %v1394_v1 = vld [vmem:[%s1877_s2 + $0xf8] sm:$0xff]   ;;  %1257 = vmatprep.subr.bf16.mxu0 %v1393_v0  ;;  %v1398_v5 = vld [vmem:[%s1877_s2 + $0xf0] sm:$0xff]   ;;  %v1401_v8 = vld [vmem:[%s1877_s2 + $0x68] sm:$0xff]  }
  0x1d   :  { %v1395_v2 = vld [vmem:[%s1877_s2 + $0x38] sm:$0xff]   ;;  %1279 = vmatprep.subr.bf16.mxu1 %v1394_v1  ;;  %v1399_v6 = vld [vmem:[%s1877_s2 + $0x30] sm:$0xff]   ;;  %v1402_v9 = vld [vmem:[%s1877_s2 + $0xe8] sm:$0xff]  }
  0x1e   :  { %v1396_v3 = vld [vmem:[%s1877_s2 + $0xb8] sm:$0xff]   ;;  %1258 = vmatpush3.bf16.msra.mxu0 %v1395_v2  ;;  %v1400_v7 = vld [vmem:[%s1877_s2 + $0xb0] sm:$0xff]   ;;  %v1403_v10 = vld [vmem:[%s1877_s2 + $0x28] sm:$0xff]  }
  0x1f   :  { %1280 = vmatpush3.bf16.msra.mxu1 %v1396_v3  ;;  %1259 = vmatprep.subr.bf16.mxu0 %v1397_v4  ;;  %v1404_v11 = vld [vmem:[%s1877_s2 + $0xa8] sm:$0xff]   ;;  %v1405_v12 = vld [vmem:[%s1877_s2 + $0x60] sm:$0xff]   ;;  %v1409_v16 = vld [vmem:[%s1877_s2 + $0x58] sm:$0xff]  }
  0x20   :  { %1281 = vmatprep.subr.bf16.mxu1 %v1398_v5  ;;  %v1406_v13 = vld [vmem:[%s1877_s2 + $0xe0] sm:$0xff]   ;;  %v1410_v17 = vld [vmem:[%s1877_s2 + $0xd8] sm:$0xff]   ;;  %v1413_v20 = vld [vmem:[%s1877_s2 + $0x50] sm:$0xff]  }
  0x21   :  { %v1407_v14 = vld [vmem:[%s1877_s2 + $0x20] sm:$0xff]   ;;  %v1411_v18 = vld [vmem:[%s1877_s2 + $0x18] sm:$0xff]   ;;  %v1414_v21 = vld [vmem:[%s1877_s2 + $0xd0] sm:$0xff]  }
  0x22   :  { %1260 = vmatpush3.bf16.msra.mxu0 %v1399_v6  ;;  %v1408_v15 = vld [vmem:[%s1877_s2 + $0xa0] sm:$0xff]   ;;  %v1412_v19 = vld [vmem:[%s1877_s2 + $0x98] sm:$0xff]   ;;  %v1415_v22 = vld [vmem:[%s1877_s2 + $0x10] sm:$0xff]  }
  0x23   :  { %1282 = vmatpush3.bf16.msra.mxu1 %v1400_v7  ;;  %1261 = vmatprep.subr.bf16.mxu0 %v1401_v8  ;;  %v1416_v23 = vld [vmem:[%s1877_s2 + $0x90] sm:$0xff]   ;;  %v1417_v24 = vld [vmem:[%s1877_s2 + $0x48] sm:$0xff]   ;;  %v1421_v28 = vld [vmem:[%s1877_s2 + $0x40] sm:$0xff]  }
  0x24   :  { %1283 = vmatprep.subr.bf16.mxu1 %v1402_v9  ;;  %v1418_v25 = vld [vmem:[%s1877_s2 + $0xc8] sm:$0xff]   ;;  %v1422_v29 = vld [vmem:[%s1877_s2 + $0xc0] sm:$0xff]   ;;  %v56_v33 = vld [vmem:[#allocation2 + $0x38] sm:$0xff] }
  0x25   :  { %v1419_v26 = vld [vmem:[%s1877_s2 + $0x8] sm:$0xff]   ;;  %v1423_v30 = vld [vmem:[%s1877_s2] sm:$0xff]   ;;  %v52_v34 = vld [vmem:[#allocation2 + $0x18] sm:$0xff] }
  0x26   :  { %1262 = vmatpush3.bf16.msra.mxu0 %v1403_v10  ;;  %v1420_v27 = vld [vmem:[%s1877_s2 + $0x88] sm:$0xff]   ;;  %v1424_v31 = vld [vmem:[%s1877_s2 + $0x80] sm:$0xff]   ;;  %v55_v38 = vld [vmem:[#allocation2 + $0x30] sm:$0xff] }
  0x27   :  { %1284 = vmatpush3.bf16.msra.mxu1 %v1404_v11  ;;  %1263 = vmatprep.subr.bf16.mxu0 %v1405_v12  ;;  %v50_v32 = vld [vmem:[#allocation2 + $0x8] sm:$0xff]  ;;  %v49_v37 = vld [vmem:[#allocation2] sm:$0xff]  ;;  %v51_v41 = vld [vmem:[#allocation2 + $0x10] sm:$0xff] }
  0x28   :  { %1285 = vmatprep.subr.bf16.mxu1 %v1406_v13  ;;  %v62_v35 = vpack.c.bf16 %v56_v33, %v50_v32  ;;  %v58_v36 = vld [vmem:[#allocation2 + $0x48] sm:$0xff]  ;;  %v61_v40 = vpack.c.bf16 %v55_v38, %v49_v37  ;;  %v57_v42 = vld [vmem:[#allocation2 + $0x40] sm:$0xff]  ;;  %v1425_v44 = vld [vmem:[%s1877_s2 + $0x178] sm:$0xff]  }
  0x29   :  { %v64_v39 = vpack.c.bf16 %v58_v36, %v52_v34  ;;  %v63_v43 = vpack.c.bf16 %v57_v42, %v51_v41  ;;  %v1426_v45 = vld [vmem:[%s1878_s3 + $0x78] sm:$0xff]   ;;  %v1429_v48 = vld [vmem:[%s1877_s2 + $0x170] sm:$0xff]   ;;  %v1433_v52 = vld [vmem:[%s1877_s2 + $0x168] sm:$0xff]  }
  0x2a   :  { %1264 = vmatpush3.bf16.msra.mxu0 %v1407_v14  ;;  %501 = vmatprep.mubr.bf16.mxu0 %v62_v35  ;;  %v1427_v46 = vld [vmem:[%s1877_s2 + $0x138] sm:$0xff]   ;;  %v1430_v49 = vld [vmem:[%s1878_s3 + $0x70] sm:$0xff]   ;;  %v1434_v53 = vld [vmem:[%s1878_s3 + $0x68] sm:$0xff]  }
  0x2b   :  { %1286 = vmatpush3.bf16.msra.mxu1 %v1408_v15  ;;  %1265 = vmatprep.subr.bf16.mxu0 %v1409_v16  ;;  %v1428_v47 = vld [vmem:[%s1878_s3 + $0x38] sm:$0xff]   ;;  %v1431_v50 = vld [vmem:[%s1877_s2 + $0x130] sm:$0xff]   ;;  %v1435_v54 = vld [vmem:[%s1877_s2 + $0x128] sm:$0xff]  }
  0x2c   :  { %1287 = vmatprep.subr.bf16.mxu1 %v1410_v17  ;;  %542 = vmatprep.mubr.bf16.mxu1 %v64_v39  ;;  %v1432_v51 = vld [vmem:[%s1878_s3 + $0x30] sm:$0xff]   ;;  %v1436_v55 = vld [vmem:[%s1878_s3 + $0x28] sm:$0xff]   ;;  %v1437_v56 = vld [vmem:[%s1877_s2 + $0x160] sm:$0xff]  }
  0x2d   :  { %v1438_v57 = vld [vmem:[%s1878_s3 + $0x60] sm:$0xff]   ;;  %v1441_v60 = vld [vmem:[%s1877_s2 + $0x158] sm:$0xff]   ;;  %v1445_v0 = vld [vmem:[%s1877_s2 + $0x150] sm:$0xff]  }
  0x2e   :  { %1266 = vmatpush3.bf16.msra.mxu0 %v1411_v18  ;;  %v1439_v58 = vld [vmem:[%s1877_s2 + $0x120] sm:$0xff]   ;;  %v1442_v61 = vld [vmem:[%s1878_s3 + $0x58] sm:$0xff]   ;;  %v1446_v1 = vld [vmem:[%s1878_s3 + $0x50] sm:$0xff]  }
  0x2f   :  { %1288 = vmatpush3.bf16.msra.mxu1 %v1412_v19  ;;  %1267 = vmatprep.subr.bf16.mxu0 %v1413_v20  ;;  %v1440_v59 = vld [vmem:[%s1878_s3 + $0x20] sm:$0xff]   ;;  %v1443_v62 = vld [vmem:[%s1877_s2 + $0x118] sm:$0xff]   ;;  %v1447_v2 = vld [vmem:[%s1877_s2 + $0x110] sm:$0xff]  }
  0x30   :  { %1289 = vmatprep.subr.bf16.mxu1 %v1414_v21  ;;  %v1444_v63 = vld [vmem:[%s1878_s3 + $0x18] sm:$0xff]   ;;  %v1448_v3 = vld [vmem:[%s1878_s3 + $0x10] sm:$0xff]   ;;  %v1449_v4 = vld [vmem:[%s1877_s2 + $0x148] sm:$0xff]  }
  0x31   :  { %v1450_v5 = vld [vmem:[%s1878_s3 + $0x48] sm:$0xff]   ;;  %v1453_v8 = vld [vmem:[%s1877_s2 + $0x140] sm:$0xff]   ;;  %v60_v13 = vld [vmem:[#allocation2 + $0x58] sm:$0xff] }
  0x32   :  { %1268 = vmatpush3.bf16.msra.mxu0 %v1415_v22  ;;  %v1451_v6 = vld [vmem:[%s1877_s2 + $0x108] sm:$0xff]   ;;  %v1454_v9 = vld [vmem:[%s1878_s3 + $0x40] sm:$0xff]   ;;  %v74_v15 = vld [vmem:[#allocation4 + $0x38] sm:$0xff] }
  0x33   :  { %1290 = vmatpush3.bf16.msra.mxu1 %v1416_v23  ;;  %1269 = vmatprep.subr.bf16.mxu0 %v1417_v24  ;;  %v1452_v7 = vld [vmem:[%s1878_s3 + $0x8] sm:$0xff]   ;;  %v1455_v10 = vld [vmem:[%s1877_s2 + $0x100] sm:$0xff]   ;;  %v59_v19 = vld [vmem:[#allocation2 + $0x50] sm:$0xff] }
  0x34   :  { %1291 = vmatprep.subr.bf16.mxu1 %v1418_v25  ;;  %v1456_v11 = vld [vmem:[%s1878_s3] sm:$0xff]   ;;  %v54_v12 = vld [vmem:[#allocation2 + $0x28] sm:$0xff]  ;;  %v73_v22 = vld [vmem:[#allocation4 + $0x30] sm:$0xff] }
  0x35   :  { %v68_v14 = vld [vmem:[#allocation4 + $0x8] sm:$0xff]  ;;  %v66_v16 = vpack.c.bf16 %v60_v13, %v54_v12  ;;  %v53_v18 = vld [vmem:[#allocation2 + $0x20] sm:$0xff]  ;;  %v1457_v24 = vld [vmem:[%s1878_s3 + $0xf8] sm:$0xff]  }
  0x36   :  { %1270 = vmatpush3.bf16.msra.mxu0 %v1419_v26  ;;  %v80_v17 = vpack.c.bf16 %v74_v15, %v68_v14  ;;  %v67_v20 = vld [vmem:[#allocation4] sm:$0xff]  ;;  %v65_v21 = vpack.c.bf16 %v59_v19, %v53_v18  ;;  %v1458_v25 = vld [vmem:[%s1878_s3 + $0x178] sm:$0xff]   ;;  %v1465_v32 = vld [vmem:[%s1878_s3 + $0xe8] sm:$0xff]  }
  0x37   :  { %1292 = vmatpush3.bf16.msra.mxu1 %v1420_v27  ;;  %1271 = vmatprep.subr.bf16.mxu0 %v1421_v28  ;;  %v79_v23 = vpack.c.bf16 %v73_v22, %v67_v20  ;;  %v1459_v26 = vld [vmem:[%s1878_s3 + $0xb8] sm:$0xff]   ;;  %v1461_v28 = vld [vmem:[%s1878_s3 + $0xf0] sm:$0xff]   ;;  %v1466_v33 = vld [vmem:[%s1878_s3 + $0x168] sm:$0xff]  }
  0x38   :  { %1293 = vmatprep.subr.bf16.mxu1 %v1422_v29  ;;  %v1460_v27 = vld [vmem:[%s1878_s3 + $0x138] sm:$0xff]   ;;  %v1462_v29 = vld [vmem:[%s1878_s3 + $0x170] sm:$0xff]   ;;  %v1467_v34 = vld [vmem:[%s1878_s3 + $0xa8] sm:$0xff]  }
  0x39   :  { %v1468_v35 = vld [vmem:[%s1878_s3 + $0x128] sm:$0xff]   ;;  %v1469_v36 = vld [vmem:[%s1878_s3 + $0xe0] sm:$0xff]   ;;  %v1474_v41 = vld [vmem:[%s1878_s3 + $0x158] sm:$0xff]  }
  0x3a   :  { %1272 = vmatpush3.bf16.msra.mxu0 %v1423_v30  ;;  %v1463_v30 = vld [vmem:[%s1878_s3 + $0xb0] sm:$0xff]   ;;  %v1470_v37 = vld [vmem:[%s1878_s3 + $0x160] sm:$0xff]   ;;  %v1475_v42 = vld [vmem:[%s1878_s3 + $0x98] sm:$0xff]  }
  0x3b   :  { %1294 = vmatpush3.bf16.msra.mxu1 %v1424_v31  ;;  %1301 = vmatprep.subr.bf16.mxu0 %v1425_v44  ;;  %v1464_v31 = vld [vmem:[%s1878_s3 + $0x130] sm:$0xff]   ;;  %v1471_v38 = vld [vmem:[%s1878_s3 + $0xa0] sm:$0xff]  }
  0x3c   :  { %1323 = vmatprep.subr.bf16.mxu1 %v1426_v45  ;;  %v1472_v39 = vld [vmem:[%s1878_s3 + $0x120] sm:$0xff]   ;;  %v1477_v44 = vld [vmem:[%s1878_s3 + $0xd0] sm:$0xff]  }
  0x3d   :  { %502 = vmatmul.mubr.bf16.vlgmr.msra.gmra.mxu0 %v61_v40  ;;  %v1473_v40 = vld [vmem:[%s1878_s3 + $0xd8] sm:$0xff]   ;;  %v1478_v45 = vld [vmem:[%s1878_s3 + $0x150] sm:$0xff]  }
  0x3e   :  { %543 = vmatmul.mubr.bf16.vlgmr.msra.gmra.mxu1 %v63_v43  ;;  %1302 = vmatpush3.bf16.msra.mxu0 %v1427_v46  ;;  %v1476_v43 = vld [vmem:[%s1878_s3 + $0x118] sm:$0xff]   ;;  %v1479_v46 = vld [vmem:[%s1878_s3 + $0x90] sm:$0xff]  }
  0x3f   :  { %1324 = vmatpush3.bf16.msra.mxu1 %v1428_v47  ;;  %1303 = vmatprep.subr.bf16.mxu0 %v1429_v48  ;;  %v1480_v47 = vld [vmem:[%s1878_s3 + $0x110] sm:$0xff]   ;;  %v1481_v48 = vld [vmem:[%s1878_s3 + $0xc8] sm:$0xff]  }
  0x40   :  { %1325 = vmatprep.subr.bf16.mxu1 %v1430_v49  ;;  %583 = vmatprep.mubr.bf16.mxu0 %v66_v16  ;;  %v1482_v49 = vld [vmem:[%s1878_s3 + $0x148] sm:$0xff]  }
  0x41   :  { %1008 = vmatprep.mubr.bf16.mxu1 %v80_v17 }
  0x42   :  { %1304 = vmatpush3.bf16.msra.mxu0 %v1431_v50  ;;  %v1483_v50 = vld [vmem:[%s1878_s3 + $0x88] sm:$0xff]  }
  0x43   :  { %1326 = vmatpush3.bf16.msra.mxu1 %v1432_v51  ;;  %1305 = vmatprep.subr.bf16.mxu0 %v1433_v52  ;;  %v1484_v51 = vld [vmem:[%s1878_s3 + $0x108] sm:$0xff]   ;;  %v1485_v52 = vld [vmem:[%s1878_s3 + $0xc0] sm:$0xff]  }
  0x44   :  { %1327 = vmatprep.subr.bf16.mxu1 %v1434_v53  ;;  %v1486_v53 = vld [vmem:[%s1878_s3 + $0x140] sm:$0xff]  }
  0x46   :  { %1306 = vmatpush3.bf16.msra.mxu0 %v1435_v54  ;;  %v1487_v54 = vld [vmem:[%s1878_s3 + $0x80] sm:$0xff]  }
  0x47   :  { %1328 = vmatpush3.bf16.msra.mxu1 %v1436_v55  ;;  %1307 = vmatprep.subr.bf16.mxu0 %v1437_v56  ;;  %v1488_v55 = vld [vmem:[%s1878_s3 + $0x100] sm:$0xff]   ;;  %v70_v56 = vld [vmem:[#allocation4 + $0x18] sm:$0xff] }
  0x48   :  { %1329 = vmatprep.subr.bf16.mxu1 %v1438_v57  ;;  %v76_v57 = vld [vmem:[#allocation4 + $0x48] sm:$0xff] }
  0x4a   :  { %1308 = vmatpush3.bf16.msra.mxu0 %v1439_v58  ;;  %v82_v58 = vpack.c.bf16 %v76_v57, %v70_v56 }
  0x4b   :  { %1330 = vmatpush3.bf16.msra.mxu1 %v1440_v59  ;;  %1309 = vmatprep.subr.bf16.mxu0 %v1441_v60  ;;  %v72_v59 = vld [vmem:[#allocation4 + $0x28] sm:$0xff]  ;;  %v78_v60 = vld [vmem:[#allocation4 + $0x58] sm:$0xff] }
  0x4c   :  { %1331 = vmatprep.subr.bf16.mxu1 %v1442_v61  ;;  %v69_v61 = vld [vmem:[#allocation4 + $0x10] sm:$0xff] }
  0x4e   :  { %1310 = vmatpush3.bf16.msra.mxu0 %v1443_v62  ;;  %v84_v62 = vpack.c.bf16 %v78_v60, %v72_v59 }
  0x4f   :  { %1332 = vmatpush3.bf16.msra.mxu1 %v1444_v63  ;;  %1311 = vmatprep.subr.bf16.mxu0 %v1445_v0  ;;  %v75_v63 = vld [vmem:[#allocation4 + $0x40] sm:$0xff] }
  0x50   :  { %1333 = vmatprep.subr.bf16.mxu1 %v1446_v1  ;;  %v71_v0 = vld [vmem:[#allocation4 + $0x20] sm:$0xff]  ;;  %v77_v1 = vld [vmem:[#allocation4 + $0x50] sm:$0xff] }
  0x52   :  { %1312 = vmatpush3.bf16.msra.mxu0 %v1447_v2  ;;  %v81_v2 = vpack.c.bf16 %v75_v63, %v69_v61 }
  0x53   :  { %1334 = vmatpush3.bf16.msra.mxu1 %v1448_v3  ;;  %1313 = vmatprep.subr.bf16.mxu0 %v1449_v4  ;;  %v83_v3 = vpack.c.bf16 %v77_v1, %v71_v0 }
  0x54   :  { %1335 = vmatprep.subr.bf16.mxu1 %v1450_v5 }
  0x56   :  { %1314 = vmatpush3.bf16.msra.mxu0 %v1451_v6 }
  0x57   :  { %1336 = vmatpush3.bf16.msra.mxu1 %v1452_v7  ;;  %1315 = vmatprep.subr.bf16.mxu0 %v1453_v8 }
  0x58   :  { %1337 = vmatprep.subr.bf16.mxu1 %v1454_v9 }
  0x5a   :  { %1316 = vmatpush3.bf16.msra.mxu0 %v1455_v10 }
  0x5b   :  { %1338 = vmatpush3.bf16.msra.mxu1 %v1456_v11  ;;  %1345 = vmatprep.subr.bf16.mxu0 %v1457_v24 }
  0x5c   :  { %1367 = vmatprep.subr.bf16.mxu1 %v1458_v25 }
  0x5d   :  { %584 = vmatmul.mubr.bf16.vlgmr.msra.gmra.mxu0 %v65_v21 }
  0x5e   :  { %1009 = vmatmul.mubr.bf16.vlgmr.msra.gmra.mxu1 %v79_v23  ;;  %1346 = vmatpush3.bf16.msra.mxu0 %v1459_v26 }
  0x5f   :  { %1368 = vmatpush3.bf16.msra.mxu1 %v1460_v27  ;;  %1347 = vmatprep.subr.bf16.mxu0 %v1461_v28 }
  0x60   :  { %1369 = vmatprep.subr.bf16.mxu1 %v1462_v29  ;;  %1049 = vmatprep.mubr.bf16.mxu0 %v82_v58 }
  0x61   :  { %1090 = vmatprep.mubr.bf16.mxu1 %v84_v62 }
  0x62   :  { %1348 = vmatpush3.bf16.msra.mxu0 %v1463_v30 }
  0x63   :  { %1370 = vmatpush3.bf16.msra.mxu1 %v1464_v31  ;;  %1349 = vmatprep.subr.bf16.mxu0 %v1465_v32 }
  0x64   :  { %1371 = vmatprep.subr.bf16.mxu1 %v1466_v33 }
  0x66   :  { %1350 = vmatpush3.bf16.msra.mxu0 %v1467_v34 }
  0x67   :  { %1372 = vmatpush3.bf16.msra.mxu1 %v1468_v35  ;;  %1351 = vmatprep.subr.bf16.mxu0 %v1469_v36 }
  0x68   :  { %1373 = vmatprep.subr.bf16.mxu1 %v1470_v37 }
  0x6a   :  { %1352 = vmatpush3.bf16.msra.mxu0 %v1471_v38 }
  0x6b   :  { %1374 = vmatpush3.bf16.msra.mxu1 %v1472_v39  ;;  %1353 = vmatprep.subr.bf16.mxu0 %v1473_v40 }
  0x6c   :  { %1375 = vmatprep.subr.bf16.mxu1 %v1474_v41 }
  0x6e   :  { %1354 = vmatpush3.bf16.msra.mxu0 %v1475_v42 }
  0x6f   :  { %1376 = vmatpush3.bf16.msra.mxu1 %v1476_v43  ;;  %1355 = vmatprep.subr.bf16.mxu0 %v1477_v44 }
  0x70   :  { %1377 = vmatprep.subr.bf16.mxu1 %v1478_v45 }
  0x72   :  { %1356 = vmatpush3.bf16.msra.mxu0 %v1479_v46 }
  0x73   :  { %1378 = vmatpush3.bf16.msra.mxu1 %v1480_v47  ;;  %1357 = vmatprep.subr.bf16.mxu0 %v1481_v48 }
  0x74   :  { %1379 = vmatprep.subr.bf16.mxu1 %v1482_v49 }
  0x76   :  { %1358 = vmatpush3.bf16.msra.mxu0 %v1483_v50 }
  0x77   :  { %1380 = vmatpush3.bf16.msra.mxu1 %v1484_v51  ;;  %1359 = vmatprep.subr.bf16.mxu0 %v1485_v52 }
  0x78   :  { %1381 = vmatprep.subr.bf16.mxu1 %v1486_v53 }
  0x7a   :  { %1360 = vmatpush3.bf16.msra.mxu0 %v1487_v54 }
  0x7b   :  { %1382 = vmatpush3.bf16.msra.mxu1 %v1488_v55 }
  0x7d   :  { %1050 = vmatmul.mubr.bf16.vlgmr.msra.gmra.mxu0 %v81_v2 }
  0x7e   :  { %1091 = vmatmul.mubr.bf16.vlgmr.msra.gmra.mxu1 %v83_v3 }
  0xfd   :  { %v1273_v4 = vpop.f32.mrf.mxu0 }
  0xfe   :  { %v1295_v5 = vpop.f32.mrf.mxu1 }
  0xff   :  { %v1274_v6 = vpop.f32.mrf.mxu0 }
 0x100   :  { %v1296_v7 = vpop.f32.mrf.mxu1  ;;  %v1275_v13 = vadd.f32 %v1274_v6, %v1273_v4 }
 0x101   :  { %v1276_v8 = vpop.f32.mrf.mxu0  ;;  %v1297_v14 = vadd.f32 %v1296_v7, %v1295_v5 }
 0x102   :  { %v1298_v9 = vpop.f32.mrf.mxu1 }
 0x103   :  { %v1277_v10 = vpop.f32.mrf.mxu0  ;;  %v545_v20 = vadd.f32 %v1297_v14, %v1275_v13 }
 0x104   :  { %v1299_v11 = vpop.f32.mrf.mxu1  ;;  %v1278_v16 = vadd.f32 %v1277_v10, %v1276_v8 }
 0x105   :  { %v1300_v17 = vadd.f32 %v1299_v11, %v1298_v9 }
 0x107   :  { %v548_v22 = vadd.f32 %v1300_v17, %v1278_v16 }
 0x11d   :  { %v1317_v12 = vpop.f32.mrf.mxu0 }
 0x11e   :  { %v1339_v33 = vpop.f32.mrf.mxu1 }
 0x11f   :  { %v1318_v15 = vpop.f32.mrf.mxu0 }
 0x120   :  { %v1319_v18 = vadd.f32 %v1318_v15, %v1317_v12  ;;  %v1340_v36 = vpop.f32.mrf.mxu1 }
 0x121   :  { %v1320_v19 = vpop.f32.mrf.mxu0  ;;  %v1341_v47 = vadd.f32 %v1340_v36, %v1339_v33 }
 0x122   :  { %v586_v23 = vadd.f32 %v1319_v18, %v545_v20  ;;  %v1342_v38 = vpop.f32.mrf.mxu1 }
 0x123   :  { %v1321_v21 = vpop.f32.mrf.mxu0 }
 0x124   :  { %v1322_v24 = vadd.f32 %v1321_v21, %v1320_v19  ;;  %v1119_v26 = vmul.f32 %v586_v23, %v586_v23  ;;  %v1343_v39 = vpop.f32.mrf.mxu1 }
 0x125   :  { %v1344_v50 = vadd.f32 %v1343_v39, %v1342_v38 }
 0x126   :  { %v589_v25 = vadd.f32 %v1322_v24, %v548_v22 }
 0x128   :  { %v1250_v27 = vpack.c.bf16 %v589_v25, %v586_v23  ;;  %v1120_v28 = vmul.f32 %v589_v25, %v589_v25 }
 0x12a   :  { %1251 = vst [vmem:[%s1879_s4] sm:$0xff] %v1250_v27   ;;  %v1121_v29 = vadd.f32 %v1120_v28, %v1119_v26 }
 0x12c   :  { %v1122_v30 = vrot.slane %v1121_v29, 4 }
 0x12e   :  { %v1123_v31 = vadd.f32 %v1122_v30, %v1121_v29 }
 0x130   :  { %v1124_v32 = vrot.slane %v1123_v31, 2 }
 0x132   :  { %v1125_v34 = vadd.f32 %v1124_v32, %v1123_v31 }
 0x134   :  { %v1126_v35 = vrot.slane %v1125_v34, 1 }
 0x136   :  { %v1127_v37 = vadd.f32 %v1126_v35, %v1125_v34 }
 0x138   :  { %1128 = vst [vmem:[%s1881_s6] sm:$0x1] %v1127_v37 }
 0x13d   :  { %v1361_v40 = vpop.f32.mrf.mxu0 }
 0x13e   :  { %v1383_v41 = vpop.f32.mrf.mxu1 }
 0x13f   :  { %v1362_v42 = vpop.f32.mrf.mxu0 }
 0x140   :  { %v1384_v43 = vpop.f32.mrf.mxu1  ;;  %v1363_v44 = vadd.f32 %v1362_v42, %v1361_v40 }
 0x141   :  { %v1364_v45 = vpop.f32.mrf.mxu0  ;;  %v1385_v53 = vadd.f32 %v1384_v43, %v1383_v41 }
 0x142   :  { %v1386_v46 = vpop.f32.mrf.mxu1  ;;  %v1052_v51 = vadd.f32 %v1363_v44, %v1341_v47 }
 0x143   :  { %v1365_v48 = vpop.f32.mrf.mxu0 }
 0x144   :  { %v1387_v49 = vpop.f32.mrf.mxu1  ;;  %v1366_v52 = vadd.f32 %v1365_v48, %v1364_v45  ;;  %v1093_v56 = vadd.f32 %v1385_v53, %v1052_v51 }
 0x145   :  { %v1388_v55 = vadd.f32 %v1387_v49, %v1386_v46 }
 0x146   :  { %v1055_v54 = vadd.f32 %v1366_v52, %v1344_v50 }
 0x148   :  { %v1096_v57 = vadd.f32 %v1388_v55, %v1055_v54 }
 0x14a   :  { %v1255_v58 = vpack.c.bf16 %v1096_v57, %v1093_v56 }
 0x14c   :  { %1256 = vst [vmem:[%s1880_s5] sm:$0xff] %v1255_v58  }
 0x14d   :  { %1141 = vsyncpa [#allocation3], 1 }
 0x14e   :  { %1142 = vsyncpa [#allocation5], 1 }

// kernel: bert_finetun.3
= control target key start
LH: loop header
LB: loop body
LE: loop exit
PB: predicated region body
PF: predicated region fallthrough
CT: control target
= control target key end

     0   :  { %s6209_s0 = inlined_call_operand.vmem [shape: f32[4], index: 0, kind: input, shape index: {}]   ;;  %s6210_s1 = inlined_call_operand.vmem [shape: bf16[2,128,128], index: 1, kind: input, shape index: {}]   ;;  %s6211_s2 = inlined_call_operand.vmem [shape: bf16[2,128,128], index: 2, kind: input, shape index: {}]   ;;  %s6212_s3 = inlined_call_operand.vmem [shape: bf16[2,128,768], index: 3, kind: input, shape index: {}]   ;;  %s6213_s4 = inlined_call_operand.vmem [shape: f32[2,1,128], index: 4, kind: input, shape index: {}]   ;;  %s6214_s5 = inlined_call_operand.vmem [shape: bf16[768,768], index: 5, kind: input, shape index: {}]   ;;  %s6215_s6 = inlined_call_operand.vmem [shape: f32[1,768], index: 6, kind: input, shape index: {}]   ;;  %s6216_s7 = inlined_call_operand.vmem [shape: f32[1,768], index: 7, kind: input, shape index: {}]   ;;  %s6217_s8 = inlined_call_operand.vmem [shape: f32[1,768], index: 8, kind: input, shape index: {}]   ;;  %s6218_s9 = inlined_call_operand.hbm [shape: f32[2,8,768], index: 9, kind: output, shape index: {0}]   ;;  %s6219_s10 = inlined_call_operand.hbm [shape: bf16[2,8,128], index: 10, kind: output, shape index: {1}]   ;;  %s6220_s11 = inlined_call_operand.hbm [shape: bf16[2,8,128], index: 11, kind: output, shape index: {2}]  }
   0x1   :  { %6223 = sst [smem:[#allocation12_spill]] %s6209_s0 }
   0x2   :  { %6224 = sst [smem:[#allocation13_spill]] %s6210_s1 }
   0x3   :  { %6225 = sst [smem:[#allocation14_spill]] %s6211_s2 }
   0x4   :  { %6226 = sst [smem:[#allocation15_spill]] %s6212_s3 }
   0x5   :  { %6227 = sst [smem:[#allocation16_spill]] %s6213_s4 }
   0x6   :  { %6228 = sst [smem:[#allocation17_spill]] %s6214_s5 }
   0x7   :  { %17 = vsyncpa [#allocation4], 0 }
   0x8   :  { %18 = vsyncpa [#allocation3], 0 }
   0x9   :  { %20 = vsyncpa [#allocation3 + $0x1], 0 }
   0xa   :  { %21 = vsyncpa [#allocation7], 0 }
   0xb   :  { %23 = vsyncpa [#allocation7 + $0x1], 0  ;;  %s4923_s17 = smov 0   ;;  %s4925_s18 = smov 0  }
   0xc   :  { %s4927_s19 = smov 0   ;;  %s4929_s20 = smov 0  }
   0xd   :  { %s4931_s21 = smov 0   ;;  %s4933_s22 = smov 0  }
   0xe LB: > { %s4954_s23 = sadd.s32 4294967295, %s4854_s22   ;;  %s6221_s24 = sadd.s32 4294967294, %s4854_s22   ;;  %s4854_s22 = sphi %s4933_s22, %s29_s22   ;;  %s4850_s21 = sphi %s4931_s21, %s6244_s21   ;;  %s4846_s20 = sphi %s4929_s20, %s6243_s20   ;;  %s4842_s19 = sphi %s4927_s19, %s6242_s19   ;;  %s4838_s18 = sphi %s4925_s18, %s6241_s18   ;;  %s4834_s17 = sphi %s4923_s17, %s6240_s17  }
   0xf   : > { %s41_s25 = sadd.s32 1, %s4850_s21  ;;  %s259_s26 = sadd.s32 1, %s4842_s19 }
  0x10   : > { %p43_p0 = scmp.ge.s32.totalorder %s41_s25, 2  ;;  %p269_p1 = scmp.ne.s32.totalorder %s4842_s19, %s4838_s18 }
  0x11   : > { %p270_p2 = scmp.eq.s32.totalorder %s4954_s23, 1  ;;  %p275_p3 = scmp.ne.s32.totalorder %s4838_s18, %s4834_s17 }
  0x12   : > { %s6246_s25 = smov (%p43_p0, %s41_s25), 0  ;;  %p276_p5 = scmp.eq.s32.totalorder %s6221_s24, 1 }
  0x13   : > { %p4966_p4 = por %p270_p2, %p269_p1  ;;  %s254_s28 = ssub.s32 %s4850_s21, %s6246_s25 }
  0x14   : > { %p3663_p6 = scmp.ge.s32.totalorder %s4854_s22, 1  ;;  %p257_p7 = scmp.eq.s32.totalorder %s254_s28, 0 }
  0x15   : > { %p4975_p8 = por %p276_p5, %p275_p3  ;;  %p339_p9 = scmp.lt.s32.totalorder %s4854_s22, 3 }
  0x16   : > { %s4981_s30 = scalar_select %p257_p7, %s4842_s19, %s259_s26  }
  0x17   : > { %p4983_p10 = pnand %p3663_p6, %p339_p9  ;;  %p4125_p11 = scmp.eq.s32.totalorder %s4954_s23, 0 }
  0x18   : > { %s6232_s0 = sld [smem:[#allocation12_spill]] }
  0x19   : > { %p4111_p12 = pneg %p4983_p10 }
  0x1b   : > { %p4112_p13 = pnand %p4125_p11, %p4111_p12 }
  0x1d   : > { %p4705_p1 = pneg %p4112_p13 }
  0x1e   : > { %s352_s15 = sshll.u32 %s6232_s0, 4  ;;  %s353_s15 = int_to_ptr.vmem [resolvable:$true] %s352_s15 }
  0x1f   : > { %s4703_s16 = scalar_lea.vmem %s353_s15, 16  ;;  %p4711_p5 = scmp.lt.s32.totalorder %s353_s15, %s353_s15 }
  0x20   : > { %p4704_p0 = scmp.ne.s32.totalorder %s353_s15, %s4703_s16  ;;  %p4712_p6 = scmp.lt.s32.totalorder %s4703_s16, %s4703_s16 }
  0x22   : > { %p4706_p2 = pnand %p4705_p1, %p4704_p0  ;;  %p4713_p7 = por %p4712_p6, %p4711_p5 }
  0x24   : > { %p4707_p3 = pneg %p4706_p2 }
  0x26   : > { %p4714_p9 = pnand %p4713_p7, %p4707_p3 }
  0x28   : > { %4717 = shalt.err (!%p4714_p9)
}
  0x29   : > { %s4856_s26 = smov [#allocation2]   ;;  %407 = sbr.rel (%p4983_p10) target bundleno = 1623 (0x657), region = 56 }
  0x2a   : > { %4114 = dma.vmem_to_smem (!%p4112_p13), %s353_s15, 16, %s4856_s26, [#allocation4]  }
  0x2e   : > { %4821 = dma.done.wait (%p4125_p11), [#allocation4], 16  }
  0x2f   : > { %4823 = vsyncadd (%p4125_p11), [#allocation4], 4294967280 }
  0x30   : > { %413 = sfence }
  0x31   : > { %p471_p12 = scmp.lt.s32.totalorder %s4846_s20, 1  ;;  %v4857_v0 = vmov 0.0   ;;  %vm4858_vm0 = vmmov 0   ;;  %s6233_s1 = sld [smem:[#allocation13_spill]] }
  0x32   : > { %4058 = vmatprep.subr.bf16.mxu0 %v4857_v0  ;;  %4078 = vmatprep.subr.bf16.mxu1 %v4857_v0  ;;  %s6234_s2 = sld [smem:[#allocation14_spill]]  ;;  %s5041_s0 = sand.u32 1, %s4838_s18  }
  0x33   : > { %s5003_s28 = scalar_select %p471_p12, %s4846_s20, 1  ;;  %4074 = vmatprep.mubr.msk.bf16.mxu0 %vm4858_vm0, %v4857_v0  ;;  %4094 = vmatprep.mubr.msk.bf16.mxu1 %vm4858_vm0, %v4857_v0 }
  0x34   : > { %s6235_s3 = sld [smem:[#allocation15_spill]] }
  0x35   : > { %s4038_s12 = sshll.u32 %s5003_s28, 6  ;;  %s4099_s13 = smul.u32 384, %s5003_s28 }
  0x36   : > { %s491_s26 = sld [smem:[#allocation2]] }
  0x37   : > { %s5009_s15 = scalar_lea.vmem %s6233_s1, %s4038_s12  ;;  %s3677_s14 = sld [smem:[#allocation2 + $0x3]] }
  0x38   : > { %s5014_s24 = scalar_lea.vmem %s6234_s2, %s4038_s12  ;;  %v4180_v1 = vld [vmem:[%s5009_s15 + $0x38] sm:$0xff]   ;;  %v4182_v3 = vld [vmem:[%s5009_s15 + $0x30] sm:$0xff]   ;;  %v4184_v5 = vld [vmem:[%s5009_s15 + $0x28] sm:$0xff]   ;;  %s3675_s12 = sld [smem:[#allocation2 + $0x1]] }
  0x39   : > { %v4181_v2 = vld [vmem:[%s5014_s24 + $0x38] sm:$0xff]   ;;  %4059 = vmatpush3.bf16.xpose.msra.mxu0 %v4180_v1  ;;  %v4183_v4 = vld [vmem:[%s5014_s24 + $0x30] sm:$0xff]   ;;  %v4185_v6 = vld [vmem:[%s5014_s24 + $0x28] sm:$0xff]   ;;  %s3668_s1 = sshll.u32 %s5041_s0, 2  ;;  %s6236_s4 = sld [smem:[#allocation16_spill]] }
  0x3a   : > { %4079 = vmatpush3.bf16.xpose.msra.mxu1 %v4181_v2  ;;  %4060 = vmatprep.subr.bf16.mxu0 %v4857_v0  ;;  %s5025_s16 = scalar_lea.vmem %s6235_s3, %s4099_s13  ;;  %v4186_v7 = vld [vmem:[%s5009_s15 + $0x20] sm:$0xff]   ;;  %v4188_v9 = vld [vmem:[%s5009_s15 + $0x18] sm:$0xff]   ;;  %v4190_v11 = vld [vmem:[%s5009_s15 + $0x10] sm:$0xff]   ;;  %s3676_s13 = sld [smem:[#allocation2 + $0x2]] }
  0x3b   : > { %4080 = vmatprep.subr.bf16.mxu1 %v4857_v0  ;;  %v4187_v8 = vld [vmem:[%s5014_s24 + $0x20] sm:$0xff]   ;;  %v4189_v10 = vld [vmem:[%s5014_s24 + $0x18] sm:$0xff]   ;;  %v4191_v12 = vld [vmem:[%s5014_s24 + $0x10] sm:$0xff]   ;;  %s6237_s5 = sld [smem:[#allocation17_spill]]  ;;  %s4860_s3 = smov [#allocation6]  }
  0x3c   : > { %v4192_v13 = vld [vmem:[%s5009_s15 + $0x8] sm:$0xff]   ;;  %v4194_v15 = vld [vmem:[%s5009_s15] sm:$0xff]   ;;  %v604_v19 = vstv %s491_s26  ;;  %v4199_v45 = vld [vmem:[%s5025_s16 + $0x158] ss:$24 sps:$4 sm:$0xff]  }
  0x3d   : > { %v4193_v14 = vld [vmem:[%s5014_s24 + $0x8] sm:$0xff]   ;;  %v4195_v16 = vld [vmem:[%s5014_s24] sm:$0xff]   ;;  %v722_v35 = vstv %s3677_s14  ;;  %v4201_v46 = vld [vmem:[%s5025_s16 + $0x15c] ss:$24 sps:$4 sm:$0xff]   ;;  %s6222_s14 = sshll.u32 %s4846_s20, 6 }
  0x3e   : > { %v499_v17 = vld [vmem:[%s5009_s15] sm:$0xf]  ;;  %v717_v24 = vstv %s3675_s12  ;;  %v4196_v43 = vld [vmem:[%s5025_s16 + $0x150] ss:$24 sps:$4 sm:$0xff]   ;;  %v4198_v44 = vld [vmem:[%s5025_s16 + $0x154] ss:$24 sps:$4 sm:$0xff]  }
  0x3f   : > { %v611_v18 = vld [vmem:[%s5014_s24] sm:$0xf]  ;;  %s488_s26 = scalar_lea.vmem %s6236_s4, %s5003_s28  ;;  %s5051_s28 = scalar_lea.vmem [#allocation8], %s3668_s1  ;;  %v4204_v47 = vld [vmem:[%s5025_s16 + $0x124] ss:$24 sps:$4 sm:$0xff]  }
  0x40   : > { %v719_v23 = vstv %s3676_s13  ;;  %s5048_s13 = scalar_lea.vmem [#allocation6], %s3668_s1  ;;  %v3694_v38 = vld [vmem:[%s488_s26] ss:$0 sm:$0xff]  ;;  %v4207_v48 = vld [vmem:[%s5025_s16 + $0x12c] ss:$24 sps:$4 sm:$0xff]   ;;  %s3427_s12 = sand.u32 1, %s4954_s23  }
  0x41   : > { %4061 = vmatpush3.bf16.xpose.msra.mxu0 %v4182_v3  ;;  %v4202_v49 = vld [vmem:[%s5025_s16 + $0x120] ss:$24 sps:$4 sm:$0xff]   ;;  %v4210_v51 = vld [vmem:[%s5025_s16 + $0xf4] ss:$24 sps:$4 sm:$0xff]   ;;  %v4208_v53 = vld [vmem:[%s5025_s16 + $0xf0] ss:$24 sps:$4 sm:$0xff]  }
  0x42   : > { %4081 = vmatpush3.bf16.xpose.msra.mxu1 %v4183_v4  ;;  %4062 = vmatprep.subr.bf16.mxu0 %v4857_v0  ;;  %v4205_v50 = vld [vmem:[%s5025_s16 + $0x128] ss:$24 sps:$4 sm:$0xff]   ;;  %v4213_v52 = vld [vmem:[%s5025_s16 + $0xfc] ss:$24 sps:$4 sm:$0xff]   ;;  %v4211_v54 = vld [vmem:[%s5025_s16 + $0xf8] ss:$24 sps:$4 sm:$0xff]  }
  0x43   : > { %4082 = vmatprep.subr.bf16.mxu1 %v4857_v0  ;;  %v4216_v55 = vld [vmem:[%s5025_s16 + $0xc4] ss:$24 sps:$4 sm:$0xff]   ;;  %v4214_v57 = vld [vmem:[%s5025_s16 + $0xc0] ss:$24 sps:$4 sm:$0xff]   ;;  %v4220_v63 = vld [vmem:[%s5025_s16 + $0x90] ss:$24 sps:$4 sm:$0xff]  }
  0x44   : > { %v4219_v56 = vld [vmem:[%s5025_s16 + $0xcc] ss:$24 sps:$4 sm:$0xff]   ;;  %v4217_v58 = vld [vmem:[%s5025_s16 + $0xc8] ss:$24 sps:$4 sm:$0xff]   ;;  %v4223_v1 = vld [vmem:[%s5025_s16 + $0x98] ss:$24 sps:$4 sm:$0xff]  }
  0x45   : > { %v4225_v2 = vld [vmem:[%s5025_s16 + $0x9c] ss:$24 sps:$4 sm:$0xff]   ;;  %v4231_v4 = vld [vmem:[%s5025_s16 + $0x6c] ss:$24 sps:$4 sm:$0xff]   ;;  %s3463_s2 = sshll.u32 %s5048_s13, 4  ;;  %s6097_s26 = scalar_lea.sflag [#allocation7], %s3427_s12  ;;  %s3464_s2 = int_to_ptr.vmem [resolvable:$true] %s3463_s2 }
  0x46   : > { %v4228_v3 = vld [vmem:[%s5025_s16 + $0x64] ss:$24 sps:$4 sm:$0xff]   ;;  %s4718_s1 = scalar_lea.vmem %s3464_s2, 64  ;;  %s4722_s4 = sshll.u32 %s4860_s3, 4  ;;  %s4723_s4 = int_to_ptr.vmem [resolvable:$false] %s4722_s4 }
  0x47   : > { %p4719_p10 = scmp.ne.s32.totalorder %s3464_s2, %s4718_s1  ;;  %p4725_p0 = scmp.lt.s32.totalorder %s3464_s2, %s4723_s4 }
  0x49   : > { %4063 = vmatpush3.bf16.xpose.msra.mxu0 %v4184_v5  ;;  %v4226_v5 = vld [vmem:[%s5025_s16 + $0x60] ss:$24 sps:$4 sm:$0xff]   ;;  %p4720_p11 = pnand %p4719_p10, %p4966_p4 }
  0x4a   : > { %4083 = vmatpush3.bf16.xpose.msra.mxu1 %v4185_v6  ;;  %4064 = vmatprep.subr.bf16.mxu0 %v4857_v0  ;;  %v4229_v6 = vld [vmem:[%s5025_s16 + $0x68] ss:$24 sps:$4 sm:$0xff]  }
  0x4b   : > { %4084 = vmatprep.subr.bf16.mxu1 %v4857_v0  ;;  %p4721_p13 = pneg %p4720_p11 }
  0x51   : > { %4065 = vmatpush3.bf16.xpose.msra.mxu0 %v4186_v7  ;;  %v4234_v7 = vld [vmem:[%s5025_s16 + $0x34] ss:$24 sps:$4 sm:$0xff]  }
  0x52   : > { %4085 = vmatpush3.bf16.xpose.msra.mxu1 %v4187_v8  ;;  %4066 = vmatprep.subr.bf16.mxu0 %v4857_v0  ;;  %v4237_v8 = vld [vmem:[%s5025_s16 + $0x3c] ss:$24 sps:$4 sm:$0xff]  }
  0x53   : > { %4086 = vmatprep.subr.bf16.mxu1 %v4857_v0 }
  0x59   : > { %4067 = vmatpush3.bf16.xpose.msra.mxu0 %v4188_v9  ;;  %v5081_v9 = vld [vmem:[%s5025_s16] sm:$0xff] }
  0x5a   : > { %4087 = vmatpush3.bf16.xpose.msra.mxu1 %v4189_v10  ;;  %4068 = vmatprep.subr.bf16.mxu0 %v4857_v0  ;;  %v760_v10 = vld [vmem:[%s5025_s16 + $0x18] sm:$0xff] }
  0x5b   : > { %4088 = vmatprep.subr.bf16.mxu1 %v4857_v0 }
  0x61   : > { %4069 = vmatpush3.bf16.xpose.msra.mxu0 %v4190_v11  ;;  %v4859_v11 = vmov 0  }
  0x62   : > { %4089 = vmatpush3.bf16.xpose.msra.mxu1 %v4191_v12  ;;  %4070 = vmatprep.subr.bf16.mxu0 %v4857_v0  ;;  %v5085_v12 = vld [vmem:[%s5025_s16 + $0x8] sm:$0xff] }
  0x63   : > { %4090 = vmatprep.subr.bf16.mxu1 %v4857_v0 }
  0x69   : > { %4071 = vmatpush3.bf16.xpose.msra.mxu0 %v4192_v13  ;;  %v761_v13 = vld [vmem:[%s5025_s16 + $0x20] sm:$0xff] }
  0x6a   : > { %4091 = vmatpush3.bf16.xpose.msra.mxu1 %v4193_v14  ;;  %4072 = vmatprep.subr.bf16.mxu0 %v4857_v0  ;;  %v4232_v14 = vld [vmem:[%s5025_s16 + $0x30] ss:$24 sps:$4 sm:$0xff]  }
  0x6b   : > { %4092 = vmatprep.subr.bf16.mxu1 %v4857_v0  ;;  %v4222_v0 = vld [vmem:[%s5025_s16 + $0x94] ss:$24 sps:$4 sm:$0xff]  }
  0x71   : > { %4073 = vmatpush3.bf16.xpose.msra.mxu0 %v4194_v15  ;;  %v4235_v15 = vld [vmem:[%s5025_s16 + $0x38] ss:$24 sps:$4 sm:$0xff]  }
  0x72   : > { %4093 = vmatpush3.bf16.xpose.msra.mxu1 %v4195_v16  ;;  %1045 = vmatprep.subr.bf16.mxu0 %v4198_v44  ;;  %v3696_v16 = vcombine.high %v5081_v9, %v760_v10  ;;  %v4289_v44 = vld [vmem:[%s6237_s5 + $0x90] ss:$24 sps:$4 sm:$0xff]  }
  0x73   : > { %1086 = vmatprep.subr.bf16.mxu1 %v4201_v46  ;;  %v4257_v46 = vld [vmem:[%s5025_s16 + $0x70] ss:$24 sps:$4 sm:$0xff]  }
  0x78   : > { %4075 = vmatmul.mubr.bf16.vlgmr.msra.gmra.mxu0 %v499_v17  ;;  %v3698_v17 = vcombine.high %v5085_v12, %v761_v13 }
  0x79   : > { %4095 = vmatmul.mubr.bf16.vlgmr.msra.gmra.mxu1 %v611_v18  ;;  %1046 = vmatpush1.bf16.msra.mxu0 %v4196_v43  ;;  %v3695_v18 = vcombine.low %v5081_v9, %v760_v10  ;;  %v4259_v43 = vld [vmem:[%s5025_s16 + $0x74] ss:$24 sps:$4 sm:$0xff]  }
  0x7a   : > { %1087 = vmatpush1.bf16.msra.mxu1 %v4199_v45  ;;  %1047 = vmatprep.subr.bf16.mxu0 %v4204_v47  ;;  %v4297_v45 = vld [vmem:[%s6237_s5 + $0x64] ss:$24 sps:$4 sm:$0xff]   ;;  %v4294_v10 = vld [vmem:[%s6237_s5 + $0x394] ss:$24 sps:$4 sm:$0xff]  }
  0x7b   : > { %1088 = vmatprep.subr.bf16.mxu1 %v4207_v48  ;;  %1077 = vmatprep.mubr.bf16.mxu0 %v4859_v11  ;;  %v4262_v47 = vld [vmem:[%s5025_s16 + $0x44] ss:$24 sps:$4 sm:$0xff]   ;;  %v4295_v48 = vld [vmem:[%s6237_s5 + $0x60] ss:$24 sps:$4 sm:$0xff]  }
  0x7c   : > { %1118 = vmatprep.mubr.bf16.mxu1 %v4859_v11 }
  0x7d   : > { %1048 = vmatpush1.bf16.msra.mxu0 %v4202_v49  ;;  %v5148_v49 = vld [vmem:[%s5025_s16 + $0x10] sm:$0xff] }
  0x7e   : > { %1089 = vmatpush1.bf16.msra.mxu1 %v4205_v50  ;;  %1049 = vmatprep.subr.bf16.mxu0 %v4210_v51  ;;  %v762_v50 = vld [vmem:[%s5025_s16 + $0x28] sm:$0xff] }
  0x7f   : > { %1090 = vmatprep.subr.bf16.mxu1 %v4213_v52  ;;  %v4303_v51 = vld [vmem:[%s6237_s5 + $0x34] ss:$24 sps:$4 sm:$0xff]   ;;  %v4260_v52 = vld [vmem:[%s5025_s16 + $0x40] ss:$24 sps:$4 sm:$0xff]  }
  0x81   : > { %1050 = vmatpush1.bf16.msra.mxu0 %v4208_v53  ;;  %v3700_v53 = vcombine.high %v5148_v49, %v762_v50 }
  0x82   : > { %1091 = vmatpush1.bf16.msra.mxu1 %v4211_v54  ;;  %1051 = vmatprep.subr.bf16.mxu0 %v4216_v55  ;;  %v4301_v54 = vld [vmem:[%s6237_s5 + $0x30] ss:$24 sps:$4 sm:$0xff]   ;;  %v4309_v55 = vld [vmem:[%s6237_s5 + $0x4] ss:$24 sps:$4 sm:$0xff]  }
  0x83   : > { %1092 = vmatprep.subr.bf16.mxu1 %v4219_v56  ;;  %v3699_v56 = vcombine.low %v5148_v49, %v762_v50  ;;  %v753_v50 = vunpack.c.h.bf16 %v5085_v12 }
  0x85   : > { %1052 = vmatpush1.bf16.msra.mxu0 %v4214_v57  ;;  %v4270_v57 = vld [vmem:[%s6237_s5 + $0x454] ss:$24 sps:$4 sm:$0xff]  }
  0x86   : > { %1093 = vmatpush1.bf16.msra.mxu1 %v4217_v58  ;;  %1053 = vmatprep.subr.bf16.mxu0 %v4222_v0  ;;  %v4307_v58 = vld [vmem:[%s6237_s5] ss:$24 sps:$4 sm:$0xff]  }
  0x87   : > { %1094 = vmatprep.subr.bf16.mxu1 %v4225_v2  ;;  %v4274_v0 = vld [vmem:[%s6237_s5 + $0x420] ss:$24 sps:$4 sm:$0xff]  }
  0x88   : > { %v4319_v2 = vld [vmem:[%s6237_s5 + $0x2a0] ss:$24 sps:$4 sm:$0xff]  }
  0x89   : > { %1054 = vmatpush1.bf16.msra.mxu0 %v4220_v63  ;;  %v4321_v63 = vld [vmem:[%s6237_s5 + $0x2a4] ss:$24 sps:$4 sm:$0xff]  }
  0x8a   : > { %1095 = vmatpush1.bf16.msra.mxu1 %v4223_v1  ;;  %1055 = vmatprep.subr.bf16.mxu0 %v4228_v3  ;;  %v4282_v1 = vld [vmem:[%s6237_s5 + $0x3f4] ss:$24 sps:$4 sm:$0xff]  }
  0x8b   : > { %1096 = vmatprep.subr.bf16.mxu1 %v4231_v4  ;;  %v4327_v3 = vld [vmem:[%s6237_s5 + $0x274] ss:$24 sps:$4 sm:$0xff]   ;;  %v4280_v4 = vld [vmem:[%s6237_s5 + $0x3f0] ss:$24 sps:$4 sm:$0xff]  }
  0x8d   : > { %1056 = vmatpush1.bf16.msra.mxu0 %v4226_v5  ;;  %v4288_v5 = vld [vmem:[%s6237_s5 + $0x3c4] ss:$24 sps:$4 sm:$0xff]  }
  0x8e   : > { %1097 = vmatpush1.bf16.msra.mxu1 %v4229_v6  ;;  %1057 = vmatprep.subr.bf16.mxu0 %v4234_v7  ;;  %v4325_v6 = vld [vmem:[%s6237_s5 + $0x270] ss:$24 sps:$4 sm:$0xff]   ;;  %v4333_v7 = vld [vmem:[%s6237_s5 + $0x244] ss:$24 sps:$4 sm:$0xff]  }
  0x8f   : > { %1098 = vmatprep.subr.bf16.mxu1 %v4237_v8  ;;  %v4286_v8 = vld [vmem:[%s6237_s5 + $0x3c0] ss:$24 sps:$4 sm:$0xff]  }
  0x91   : > { %1058 = vmatpush1.bf16.msra.mxu0 %v4232_v14  ;;  %v4292_v14 = vld [vmem:[%s6237_s5 + $0x390] ss:$24 sps:$4 sm:$0xff]  }
  0x92   : > { %1099 = vmatpush1.bf16.msra.mxu1 %v4235_v15  ;;  %1059 = vmatprep.subr.bf16.mxu0 %v3696_v16  ;;  %v4300_v15 = vld [vmem:[%s6237_s5 + $0x364] ss:$24 sps:$4 sm:$0xff]   ;;  %v4337_v16 = vld [vmem:[%s6237_s5 + $0x210] ss:$24 sps:$4 sm:$0xff]  }
  0x93   : > { %1100 = vmatprep.subr.bf16.mxu1 %v3698_v17  ;;  %v4345_v17 = vld [vmem:[%s6237_s5 + $0x1e4] ss:$24 sps:$4 sm:$0xff]  }
  0x95   : > { %1060 = vmatpush1.bf16.msra.mxu0 %v3695_v18  ;;  %v4298_v18 = vld [vmem:[%s6237_s5 + $0x360] ss:$24 sps:$4 sm:$0xff]  }
 0x138   : > { %v598_v20 = vpop.f32.mrf.mxu0 }
 0x139   : > { %v605_v21 = vmul.f32 %v604_v19, %v598_v20  ;;  %v710_v22 = vpop.f32.mrf.mxu1  ;;  %v3697_v19 = vcombine.low %v5085_v12, %v761_v13  ;;  %v4244_v20 = vld [vmem:[%s5025_s16 + $0x164] ss:$24 sps:$4 sm:$0xff]   ;;  %v4339_v13 = vld [vmem:[%s6237_s5 + $0x214] ss:$24 sps:$4 sm:$0xff]  }
 0x13a   : > { %v716_v25 = vmax.f32 %v710_v22, 0.0  ;;  %v4076_v26 = vpop.f32.mrf.mxu0  ;;  %1127 = vmatprep.subr.bf16.mxu0 %v4244_v20  ;;  %v4343_v20 = vld [vmem:[%s6237_s5 + $0x1e0] ss:$24 sps:$4 sm:$0xff]  }
 0x13b   : > { %v606_v27 = vmax.f32 %v605_v21, 0.0  ;;  %v4096_v28 = vpop.f32.mrf.mxu1  ;;  %1101 = vmatpush1.bf16.msra.mxu1 %v3697_v19  ;;  %v4267_v21 = vld [vmem:[%s6237_s5 + $0x154] ss:$24 sps:$4 sm:$0xff]  }
 0x13c   : > { %v720_v29 = vmul.f32 %v719_v23, %v716_v25  ;;  %v601_v30 = vpop.f32.mrf.mxu0  ;;  %2934 = vmatprep.subr.bf16.mxu1 %v4267_v21  ;;  %v4242_v25 = vld [vmem:[%s5025_s16 + $0x160] ss:$24 sps:$4 sm:$0xff]   ;;  %v4265_v28 = vld [vmem:[%s6237_s5 + $0x150] ss:$24 sps:$4 sm:$0xff]   ;;  %v4306_v19 = vld [vmem:[%s6237_s5 + $0x334] ss:$24 sps:$4 sm:$0xff]  }
 0x13d   : > { %v607_v31 = vpack.c.bf16 %v606_v27, %v606_v27  ;;  %v718_v32 = vmul.f32 %v717_v24, %v606_v27  ;;  %v713_v33 = vpop.f32.mrf.mxu1  ;;  %v4247_v27 = vld [vmem:[%s5025_s16 + $0x134] ss:$24 sps:$4 sm:$0xff]   ;;  %v4245_v30 = vld [vmem:[%s5025_s16 + $0x130] ss:$24 sps:$4 sm:$0xff]  }
 0x13e   : > { %v4077_v34 = vpop.f32.mrf.mxu0  ;;  %v4279_v33 = vld [vmem:[%s6237_s5 + $0xf4] ss:$24 sps:$4 sm:$0xff]  }
 0x13f   : > { %v721_v36 = vadd.f32 %v720_v29, %v718_v32  ;;  %v4097_v37 = vpop.f32.mrf.mxu1  ;;  %608 = vst [vmem:[%s5048_s13] sm:$0xf] %v607_v31  ;;  %v4273_v29 = vld [vmem:[%s6237_s5 + $0x124] ss:$24 sps:$4 sm:$0xff]   ;;  %v4271_v32 = vld [vmem:[%s6237_s5 + $0x120] ss:$24 sps:$4 sm:$0xff]  }
 0x140   : > { %v4250_v31 = vld [vmem:[%s5025_s16 + $0x104] ss:$24 sps:$4 sm:$0xff]   ;;  %v4248_v34 = vld [vmem:[%s5025_s16 + $0x100] ss:$24 sps:$4 sm:$0xff]   ;;  %v4351_v21 = vld [vmem:[%s6237_s5 + $0x1b4] ss:$24 sps:$4 sm:$0xff]  }
 0x141   : > { %v723_v39 = vadd.f32 %v722_v35, %v721_v36  ;;  %v4253_v35 = vld [vmem:[%s5025_s16 + $0xd4] ss:$24 sps:$4 sm:$0xff]   ;;  %v4277_v36 = vld [vmem:[%s6237_s5 + $0xf0] ss:$24 sps:$4 sm:$0xff]   ;;  %v4285_v37 = vld [vmem:[%s6237_s5 + $0xc4] ss:$24 sps:$4 sm:$0xff]  }
 0x143   : > { %v734_v40 = vadd.f32 %v3694_v38, %v723_v39  ;;  %v724_v41 = vmax.f32 %v723_v39, 0.0  ;;  %v4251_v38 = vld [vmem:[%s5025_s16 + $0xd0] ss:$24 sps:$4 sm:$0xff]   ;;  %v4256_v39 = vld [vmem:[%s5025_s16 + $0xa4] ss:$24 sps:$4 sm:$0xff]  }
 0x145   : > { %735 = vmax.xlane.f32.xlu0 %v734_v40  ;;  %v725_v42 = vpack.c.bf16 %v724_v41, %v724_v41  ;;  %v4291_v41 = vld [vmem:[%s6237_s5 + $0x94] ss:$24 sps:$4 sm:$0xff]  }
 0x147   : > { %726 = vst [vmem:[%s5051_s28] sm:$0xf] %v725_v42  ;;  %v4254_v42 = vld [vmem:[%s5025_s16 + $0xa0] ss:$24 sps:$4 sm:$0xff]   ;;  %s3461_s16 = scalar_lea.hbm %s6219_s10, %s6222_s14 }
 0x1ce   : > { %v736_v59 = vpop.xlane.xlu0 %735 }
 0x1cf   : > { %v737_v60 = vsub.f32 %v734_v40, %v736_v59  ;;  %v4283_v40 = vld [vmem:[%s6237_s5 + $0xc0] ss:$24 sps:$4 sm:$0xff]   ;;  %v4315_v59 = vld [vmem:[%s6237_s5 + $0x2d4] ss:$24 sps:$4 sm:$0xff]  }
 0x1d1   : > { %v738_v61 = vmul.f32 1.442695, %v737_v60  ;;  %v4268_v60 = vld [vmem:[%s6237_s5 + $0x450] ss:$24 sps:$4 sm:$0xff]  }
 0x1d3   : > { %4697 = vpow2.f32 %v738_v61  ;;  %v4276_v61 = vld [vmem:[%s6237_s5 + $0x424] ss:$24 sps:$4 sm:$0xff]  }
 0x1e0   : > { %v4698_v62 = vpop.eup %4697 }
 0x1e1   : > { %740 = vadd.xlane.f32.xlu0 %v4698_v62 }
 0x26a   : > { %v741_v22 = vpop.xlane.xlu0 %740 }
 0x26b   : > { %4699 = vrcp.f32 %v741_v22  ;;  %v4304_v22 = vld [vmem:[%s6237_s5 + $0x330] ss:$24 sps:$4 sm:$0xff]  }
 0x278   : > { %v4700_v23 = vpop.eup %4699 }
 0x279   : > { %v743_v24 = vmul.f32 %v4700_v23, %v4698_v62  ;;  %v4313_v62 = vld [vmem:[%s6237_s5 + $0x2d0] ss:$24 sps:$4 sm:$0xff]   ;;  %v4312_v23 = vld [vmem:[%s6237_s5 + $0x304] ss:$24 sps:$4 sm:$0xff]  }
 0x27b   : > { %v5099_v26 = vpack.c.bf16 %v743_v24, %v743_v24  ;;  %v4349_v24 = vld [vmem:[%s6237_s5 + $0x1b0] ss:$24 sps:$4 sm:$0xff]  }
 0x27d   : > { %1078 = vmatmul.mubr.bf16.vlgmr.msra.gmra.mxu0 %v5099_v26  ;;  %1119 = vmatmul.mubr.bf16.vlgmr.msra.gmra.mxu1 %v5099_v26 }
 0x27e   : > { %1128 = vmatpush1.bf16.msra.mxu0 %v4242_v25  ;;  %1159 = vmatprep.mubr.bf16.mxu0 %v4859_v11  ;;  %v4331_v11 = vld [vmem:[%s6237_s5 + $0x240] ss:$24 sps:$4 sm:$0xff]  }
 0x27f   : > { %1129 = vmatprep.subr.bf16.mxu0 %v4247_v27  ;;  %2935 = vmatpush1.bf16.msra.mxu1 %v4265_v28  ;;  %v4310_v25 = vld [vmem:[%s6237_s5 + $0x300] ss:$24 sps:$4 sm:$0xff]   ;;  %v4316_v27 = vld [vmem:[%s6237_s5 + $0x5d0] ss:$24 sps:$4 sm:$0xff]   ;;  %v4324_v28 = vld [vmem:[%s6237_s5 + $0x5a4] ss:$24 sps:$4 sm:$0xff]  }
 0x280   : > { %2936 = vmatprep.subr.bf16.mxu1 %v4273_v29  ;;  %v4322_v29 = vld [vmem:[%s6237_s5 + $0x5a0] ss:$24 sps:$4 sm:$0xff]  }
 0x282   : > { %1130 = vmatpush1.bf16.msra.mxu0 %v4245_v30  ;;  %v4330_v30 = vld [vmem:[%s6237_s5 + $0x574] ss:$24 sps:$4 sm:$0xff]  }
 0x283   : > { %1131 = vmatprep.subr.bf16.mxu0 %v4250_v31  ;;  %2937 = vmatpush1.bf16.msra.mxu1 %v4271_v32  ;;  %v4357_v31 = vld [vmem:[%s6237_s5 + $0x184] ss:$24 sps:$4 sm:$0xff]   ;;  %v4355_v32 = vld [vmem:[%s6237_s5 + $0x180] ss:$24 sps:$4 sm:$0xff]  }
 0x284   : > { %2938 = vmatprep.subr.bf16.mxu1 %v4279_v33  ;;  %v4328_v33 = vld [vmem:[%s6237_s5 + $0x570] ss:$24 sps:$4 sm:$0xff]  }
 0x286   : > { %1132 = vmatpush1.bf16.msra.mxu0 %v4248_v34  ;;  %v4336_v34 = vld [vmem:[%s6237_s5 + $0x544] ss:$24 sps:$4 sm:$0xff]  }
 0x287   : > { %1133 = vmatprep.subr.bf16.mxu0 %v4253_v35  ;;  %2939 = vmatpush1.bf16.msra.mxu1 %v4277_v36  ;;  %v4363_v35 = vld [vmem:[%s6237_s5 + $0x754] ss:$24 sps:$4 sm:$0xff]   ;;  %v4334_v36 = vld [vmem:[%s6237_s5 + $0x540] ss:$24 sps:$4 sm:$0xff]  }
 0x288   : > { %2940 = vmatprep.subr.bf16.mxu1 %v4285_v37  ;;  %v4342_v37 = vld [vmem:[%s6237_s5 + $0x514] ss:$24 sps:$4 sm:$0xff]  }
 0x28a   : > { %1134 = vmatpush1.bf16.msra.mxu0 %v4251_v38  ;;  %v4340_v38 = vld [vmem:[%s6237_s5 + $0x510] ss:$24 sps:$4 sm:$0xff]  }
 0x28b   : > { %1135 = vmatprep.subr.bf16.mxu0 %v4256_v39  ;;  %2941 = vmatpush1.bf16.msra.mxu1 %v4283_v40  ;;  %v4348_v39 = vld [vmem:[%s6237_s5 + $0x4e4] ss:$24 sps:$4 sm:$0xff]   ;;  %v4346_v40 = vld [vmem:[%s6237_s5 + $0x4e0] ss:$24 sps:$4 sm:$0xff]  }
 0x28c   : > { %2942 = vmatprep.subr.bf16.mxu1 %v4291_v41  ;;  %v4354_v41 = vld [vmem:[%s6237_s5 + $0x4b4] ss:$24 sps:$4 sm:$0xff]  }
 0x28e   : > { %1136 = vmatpush1.bf16.msra.mxu0 %v4254_v42  ;;  %v4352_v42 = vld [vmem:[%s6237_s5 + $0x4b0] ss:$24 sps:$4 sm:$0xff]  }
 0x28f   : > { %1137 = vmatprep.subr.bf16.mxu0 %v4259_v43  ;;  %2943 = vmatpush1.bf16.msra.mxu1 %v4289_v44  ;;  %v4360_v43 = vld [vmem:[%s6237_s5 + $0x484] ss:$24 sps:$4 sm:$0xff]   ;;  %v4358_v44 = vld [vmem:[%s6237_s5 + $0x480] ss:$24 sps:$4 sm:$0xff]  }
 0x290   : > { %2944 = vmatprep.subr.bf16.mxu1 %v4297_v45  ;;  %v4366_v45 = vld [vmem:[%s6237_s5 + $0x15c] ss:$24 sps:$4 sm:$0xff]  }
 0x292   : > { %1138 = vmatpush1.bf16.msra.mxu0 %v4257_v46  ;;  %v750_v46 = vunpack.c.l.bf16 %v5081_v9 }
 0x293   : > { %1139 = vmatprep.subr.bf16.mxu0 %v4262_v47  ;;  %2945 = vmatpush1.bf16.msra.mxu1 %v4295_v48  ;;  %v752_v47 = vunpack.c.l.bf16 %v5085_v12  ;;  %v751_v48 = vunpack.c.h.bf16 %v5081_v9  ;;  %v4361_v9 = vld [vmem:[%s6237_s5 + $0x750] ss:$24 sps:$4 sm:$0xff]  }
 0x294   : > { %2946 = vmatprep.subr.bf16.mxu1 %v4303_v51  ;;  %v4364_v12 = vld [vmem:[%s6237_s5 + $0x158] ss:$24 sps:$4 sm:$0xff]  }
 0x296   : > { %1140 = vmatpush1.bf16.msra.mxu0 %v4260_v52 }
 0x297   : > { %1141 = vmatprep.subr.bf16.mxu0 %v3700_v53  ;;  %2947 = vmatpush1.bf16.msra.mxu1 %v4301_v54 }
 0x298   : > { %2948 = vmatprep.subr.bf16.mxu1 %v4309_v55 }
 0x29a   : > { %1142 = vmatpush1.bf16.msra.mxu0 %v3699_v56 }
 0x29b   : > { %2975 = vmatprep.subr.bf16.mxu0 %v4270_v57  ;;  %2949 = vmatpush1.bf16.msra.mxu1 %v4307_v58 }
 0x29c   : > { %2950 = vmatprep.subr.bf16.mxu1 %v4315_v59 }
 0x29d   : > { %1160 = vmatmul.mubr.bf16.vlgmr.msra.gmra.mxu0 %v5099_v26  ;;  %v4318_v26 = vld [vmem:[%s6237_s5 + $0x5d4] ss:$24 sps:$4 sm:$0xff]  }
 0x29e   : > { %2976 = vmatpush1.bf16.msra.mxu0 %v4268_v60 }
 0x29f   : > { %2977 = vmatprep.subr.bf16.mxu0 %v4276_v61  ;;  %2951 = vmatpush2.bf16.msra.mxu1 %v4313_v62 }
 0x2a0   : > { %2952 = vmatprep.subr.bf16.mxu1 %v4321_v63 }
 0x2a2   : > { %2978 = vmatpush1.bf16.msra.mxu0 %v4274_v0 }
 0x2a3   : > { %2979 = vmatprep.subr.bf16.mxu0 %v4282_v1  ;;  %2953 = vmatpush2.bf16.msra.mxu1 %v4319_v2 }
 0x2a4   : > { %2954 = vmatprep.subr.bf16.mxu1 %v4327_v3  ;;  %v4369_v3 = vld [vmem:[%s6237_s5 + $0x724] ss:$24 sps:$4 sm:$0xff]  }
 0x2a6   : > { %2980 = vmatpush1.bf16.msra.mxu0 %v4280_v4  ;;  %v4372_v4 = vld [vmem:[%s6237_s5 + $0x12c] ss:$24 sps:$4 sm:$0xff]  }
 0x2a7   : > { %2981 = vmatprep.subr.bf16.mxu0 %v4288_v5  ;;  %2955 = vmatpush2.bf16.msra.mxu1 %v4325_v6  ;;  %v4367_v5 = vld [vmem:[%s6237_s5 + $0x720] ss:$24 sps:$4 sm:$0xff]  }
 0x2a8   : > { %2956 = vmatprep.subr.bf16.mxu1 %v4333_v7  ;;  %v4370_v6 = vld [vmem:[%s6237_s5 + $0x128] ss:$24 sps:$4 sm:$0xff]   ;;  %v4375_v7 = vld [vmem:[%s6237_s5 + $0x6f4] ss:$24 sps:$4 sm:$0xff]  }
 0x2aa   : > { %2982 = vmatpush1.bf16.msra.mxu0 %v4286_v8  ;;  %v4378_v8 = vld [vmem:[%s6237_s5 + $0xfc] ss:$24 sps:$4 sm:$0xff]  }
 0x2ab   : > { %2983 = vmatprep.subr.bf16.mxu0 %v4294_v10  ;;  %2957 = vmatpush2.bf16.msra.mxu1 %v4331_v11  ;;  %v4373_v10 = vld [vmem:[%s6237_s5 + $0x6f0] ss:$24 sps:$4 sm:$0xff]  }
 0x2ac   : > { %2958 = vmatprep.subr.bf16.mxu1 %v4339_v13  ;;  %v4376_v11 = vld [vmem:[%s6237_s5 + $0xf8] ss:$24 sps:$4 sm:$0xff]   ;;  %v4381_v13 = vld [vmem:[%s6237_s5 + $0x6c4] ss:$24 sps:$4 sm:$0xff]  }
 0x2ae   : > { %2984 = vmatpush1.bf16.msra.mxu0 %v4292_v14  ;;  %v4384_v14 = vld [vmem:[%s6237_s5 + $0xcc] ss:$24 sps:$4 sm:$0xff]  }
 0x2af   : > { %2985 = vmatprep.subr.bf16.mxu0 %v4300_v15  ;;  %2959 = vmatpush2.bf16.msra.mxu1 %v4337_v16  ;;  %v4379_v15 = vld [vmem:[%s6237_s5 + $0x6c0] ss:$24 sps:$4 sm:$0xff]  }
 0x2b0   : > { %2960 = vmatprep.subr.bf16.mxu1 %v4345_v17  ;;  %v4382_v16 = vld [vmem:[%s6237_s5 + $0xc8] ss:$24 sps:$4 sm:$0xff]   ;;  %v4387_v17 = vld [vmem:[%s6237_s5 + $0x694] ss:$24 sps:$4 sm:$0xff]  }
 0x2b2   : > { %2986 = vmatpush1.bf16.msra.mxu0 %v4298_v18  ;;  %v4390_v18 = vld [vmem:[%s6237_s5 + $0x9c] ss:$24 sps:$4 sm:$0xff]  }
 0x2b3   : > { %2987 = vmatprep.subr.bf16.mxu0 %v4306_v19  ;;  %2961 = vmatpush2.bf16.msra.mxu1 %v4343_v20  ;;  %v4385_v19 = vld [vmem:[%s6237_s5 + $0x690] ss:$24 sps:$4 sm:$0xff]  }
 0x2b4   : > { %2962 = vmatprep.subr.bf16.mxu1 %v4351_v21  ;;  %v4388_v20 = vld [vmem:[%s6237_s5 + $0x98] ss:$24 sps:$4 sm:$0xff]   ;;  %v4393_v21 = vld [vmem:[%s6237_s5 + $0x664] ss:$24 sps:$4 sm:$0xff]  }
 0x2b6   : > { %2988 = vmatpush1.bf16.msra.mxu0 %v4304_v22  ;;  %v4396_v22 = vld [vmem:[%s6237_s5 + $0x6c] ss:$24 sps:$4 sm:$0xff]  }
 0x2b7   : > { %2989 = vmatprep.subr.bf16.mxu0 %v4312_v23  ;;  %2963 = vmatpush2.bf16.msra.mxu1 %v4349_v24  ;;  %v4391_v23 = vld [vmem:[%s6237_s5 + $0x660] ss:$24 sps:$4 sm:$0xff]  }
 0x2b8   : > { %2964 = vmatprep.subr.bf16.mxu1 %v4357_v31  ;;  %v4394_v24 = vld [vmem:[%s6237_s5 + $0x68] ss:$24 sps:$4 sm:$0xff]   ;;  %v755_v31 = vunpack.c.h.bf16 %v5148_v49 }
 0x2ba   : > { %2990 = vmatpush1.bf16.msra.mxu0 %v4310_v25  ;;  %v4399_v25 = vld [vmem:[%s6237_s5 + $0x634] ss:$24 sps:$4 sm:$0xff]  }
 0x2bb   : > { %2991 = vmatprep.subr.bf16.mxu0 %v4318_v26  ;;  %2965 = vmatpush2.bf16.msra.mxu1 %v4355_v32  ;;  %v4402_v26 = vld [vmem:[%s6237_s5 + $0x3c] ss:$24 sps:$4 sm:$0xff]  }
 0x2bc   : > { %3016 = vmatprep.subr.bf16.mxu1 %v4363_v35 }
 0x2be   : > { %2992 = vmatpush2.bf16.msra.mxu0 %v4316_v27  ;;  %v4397_v27 = vld [vmem:[%s6237_s5 + $0x630] ss:$24 sps:$4 sm:$0xff]  }
 0x2bf   : > { %2993 = vmatprep.subr.bf16.mxu0 %v4324_v28  ;;  %v4400_v28 = vld [vmem:[%s6237_s5 + $0x38] ss:$24 sps:$4 sm:$0xff]  }
 0x2c2   : > { %2994 = vmatpush2.bf16.msra.mxu0 %v4322_v29  ;;  %v4405_v29 = vld [vmem:[%s6237_s5 + $0x604] ss:$24 sps:$4 sm:$0xff]  }
 0x2c3   : > { %2995 = vmatprep.subr.bf16.mxu0 %v4330_v30  ;;  %v4408_v30 = vld [vmem:[%s6237_s5 + $0xc] ss:$24 sps:$4 sm:$0xff]  }
 0x2c6   : > { %2996 = vmatpush2.bf16.msra.mxu0 %v4328_v33  ;;  %v4403_v33 = vld [vmem:[%s6237_s5 + $0x600] ss:$24 sps:$4 sm:$0xff]  }
 0x2c7   : > { %2997 = vmatprep.subr.bf16.mxu0 %v4336_v34  ;;  %v4406_v34 = vld [vmem:[%s6237_s5 + $0x8] ss:$24 sps:$4 sm:$0xff]  }
 0x2ca   : > { %2998 = vmatpush2.bf16.msra.mxu0 %v4334_v36  ;;  %v4411_v36 = vld [vmem:[%s6237_s5 + $0x8d4] ss:$24 sps:$4 sm:$0xff]  }
 0x2cb   : > { %2999 = vmatprep.subr.bf16.mxu0 %v4342_v37  ;;  %v4414_v37 = vld [vmem:[%s6237_s5 + $0x2dc] ss:$24 sps:$4 sm:$0xff]  }
 0x2ce   : > { %3000 = vmatpush2.bf16.msra.mxu0 %v4340_v38 }
 0x2cf   : > { %3001 = vmatprep.subr.bf16.mxu0 %v4348_v39 }
 0x2d2   : > { %3002 = vmatpush2.bf16.msra.mxu0 %v4346_v40 }
 0x2d3   : > { %3003 = vmatprep.subr.bf16.mxu0 %v4354_v41  ;;  %v4409_v41 = vld [vmem:[%s6237_s5 + $0x8d0] ss:$24 sps:$4 sm:$0xff]  }
 0x2d6   : > { %3004 = vmatpush2.bf16.msra.mxu0 %v4352_v42  ;;  %v4412_v42 = vld [vmem:[%s6237_s5 + $0x2d8] ss:$24 sps:$4 sm:$0xff]  }
 0x2d7   : > { %3005 = vmatprep.subr.bf16.mxu0 %v4360_v43 }
 0x2da   : > { %3006 = vmatpush2.bf16.msra.mxu0 %v4358_v44  ;;  %v4417_v44 = vld [vmem:[%s6237_s5 + $0x8a4] ss:$24 sps:$4 sm:$0xff]  }
 0x2db   : > { %3057 = vmatprep.subr.bf16.mxu0 %v4366_v45  ;;  %v4420_v45 = vld [vmem:[%s6237_s5 + $0x2ac] ss:$24 sps:$4 sm:$0xff]  }
 0x33d   : > { %v1079_v51 = vpop.f32.mrf.mxu0  ;;  %v1120_v52 = vpop.f32.mrf.mxu1 }
 0x33e   : > { %v1080_v53 = vadd.f32 %v1079_v51, %v750_v46  ;;  %v1121_v54 = vadd.f32 %v1120_v52, %v752_v47  ;;  %v4415_v46 = vld [vmem:[%s6237_s5 + $0x8a0] ss:$24 sps:$4 sm:$0xff]   ;;  %v4421_v51 = vld [vmem:[%s6237_s5 + $0x870] ss:$24 sps:$4 sm:$0xff]  }
 0x33f   : > { %v1081_v55 = vpop.f32.mrf.mxu0  ;;  %v1122_v56 = vpop.f32.mrf.mxu1  ;;  %v4418_v47 = vld [vmem:[%s6237_s5 + $0x2a8] ss:$24 sps:$4 sm:$0xff]   ;;  %v4424_v52 = vld [vmem:[%s6237_s5 + $0x278] ss:$24 sps:$4 sm:$0xff]  }
 0x340   : > { %v1082_v57 = vadd.f32 %v1081_v55, %v751_v48  ;;  %v1123_v58 = vadd.f32 %v1122_v56, %v753_v50  ;;  %v5331_v63 = vpack.c.bf16 %v1080_v53, %v1080_v53  ;;  %v5333_v0 = vpack.c.bf16 %v1121_v54, %v1121_v54  ;;  %v4423_v48 = vld [vmem:[%s6237_s5 + $0x874] ss:$24 sps:$4 sm:$0xff]   ;;  %v4429_v53 = vld [vmem:[%s6237_s5 + $0x844] ss:$24 sps:$4 sm:$0xff]   ;;  %v4427_v55 = vld [vmem:[%s6237_s5 + $0x840] ss:$24 sps:$4 sm:$0xff]  }
 0x341   : > { %v1083_v59 = vpop.f32.mrf.mxu0  ;;  %v1124_v60 = vpop.f32.mrf.mxu1  ;;  %v4426_v50 = vld [vmem:[%s6237_s5 + $0x27c] ss:$24 sps:$4 sm:$0xff]   ;;  %v4432_v54 = vld [vmem:[%s6237_s5 + $0x24c] ss:$24 sps:$4 sm:$0xff]   ;;  %v4430_v56 = vld [vmem:[%s6237_s5 + $0x248] ss:$24 sps:$4 sm:$0xff]  }
 0x342   : > { %v5321_v61 = vpack.c.bf16 %v1082_v57, %v1082_v57  ;;  %v5323_v62 = vpack.c.bf16 %v1123_v58, %v1123_v58  ;;  %v4435_v57 = vld [vmem:[%s6237_s5 + $0x814] ss:$24 sps:$4 sm:$0xff]   ;;  %v4433_v59 = vld [vmem:[%s6237_s5 + $0x810] ss:$24 sps:$4 sm:$0xff]  }
 0x343   : > { %v1084_v1 = vpop.f32.mrf.mxu0  ;;  %v1125_v2 = vpop.f32.mrf.mxu1  ;;  %v4438_v58 = vld [vmem:[%s6237_s5 + $0x21c] ss:$24 sps:$4 sm:$0xff]   ;;  %v4436_v60 = vld [vmem:[%s6237_s5 + $0x218] ss:$24 sps:$4 sm:$0xff]  }
 0x344   : > { %2966 = vmatprep.mubr.bf16.mxu1 %v5321_v61  ;;  %3007 = vmatprep.mubr.bf16.mxu0 %v5323_v62  ;;  %v4439_v1 = vld [vmem:[%s6237_s5 + $0x7e0] ss:$24 sps:$4 sm:$0xff]  }
 0x345   : > { %2967 = vmatmul.mubr.bf16.vlgmr.msra.gmra.mxu1 %v5331_v63  ;;  %3008 = vmatmul.mubr.bf16.vlgmr.msra.gmra.mxu0 %v5333_v0  ;;  %v4442_v2 = vld [vmem:[%s6237_s5 + $0x1e8] ss:$24 sps:$4 sm:$0xff]  }
 0x346   : > { %3017 = vmatpush1.bf16.msra.mxu1 %v4361_v9  ;;  %3058 = vmatpush1.bf16.msra.mxu0 %v4364_v12  ;;  %v4441_v9 = vld [vmem:[%s6237_s5 + $0x7e4] ss:$24 sps:$4 sm:$0xff]  }
 0x347   : > { %3089 = vmatprep.mubr.bf16.mxu0 %v5321_v61  ;;  %3018 = vmatprep.subr.bf16.mxu1 %v4369_v3  ;;  %v4444_v12 = vld [vmem:[%s6237_s5 + $0x1ec] ss:$24 sps:$4 sm:$0xff]  }
 0x348   : > { %3059 = vmatprep.subr.bf16.mxu0 %v4372_v4  ;;  %v4447_v3 = vld [vmem:[%s6237_s5 + $0x7b4] ss:$24 sps:$4 sm:$0xff]  }
 0x349   : > { %v4450_v4 = vld [vmem:[%s6237_s5 + $0x1bc] ss:$24 sps:$4 sm:$0xff]  }
 0x34a   : > { %3019 = vmatpush1.bf16.msra.mxu1 %v4367_v5  ;;  %3060 = vmatpush1.bf16.msra.mxu0 %v4370_v6  ;;  %v4445_v5 = vld [vmem:[%s6237_s5 + $0x7b0] ss:$24 sps:$4 sm:$0xff]  }
 0x34b   : > { %3020 = vmatprep.subr.bf16.mxu1 %v4375_v7  ;;  %3061 = vmatprep.subr.bf16.mxu0 %v4378_v8  ;;  %v4448_v6 = vld [vmem:[%s6237_s5 + $0x1b8] ss:$24 sps:$4 sm:$0xff]   ;;  %v754_v7 = vunpack.c.l.bf16 %v5148_v49  ;;  %v4453_v8 = vld [vmem:[%s6237_s5 + $0x784] ss:$24 sps:$4 sm:$0xff]   ;;  %v4454_v49 = vld [vmem:[%s6237_s5 + $0x188] ss:$24 sps:$4 sm:$0xff]  }
 0x34e   : > { %3021 = vmatpush1.bf16.msra.mxu1 %v4373_v10  ;;  %3062 = vmatpush1.bf16.msra.mxu0 %v4376_v11  ;;  %v4456_v10 = vld [vmem:[%s6237_s5 + $0x18c] ss:$24 sps:$4 sm:$0xff]   ;;  %v4451_v11 = vld [vmem:[%s6237_s5 + $0x780] ss:$24 sps:$4 sm:$0xff]  }
 0x34f   : > { %3022 = vmatprep.subr.bf16.mxu1 %v4381_v13  ;;  %3063 = vmatprep.subr.bf16.mxu0 %v4384_v14  ;;  %v4459_v14 = vld [vmem:[%s6237_s5 + $0x45c] ss:$24 sps:$4 sm:$0xff]  }
 0x352   : > { %3023 = vmatpush1.bf16.msra.mxu1 %v4379_v15  ;;  %3064 = vmatpush1.bf16.msra.mxu0 %v4382_v16  ;;  %v4462_v15 = vld [vmem:[%s6237_s5 + $0x75c] ss:$24 sps:$4 sm:$0xff]   ;;  %v4457_v16 = vld [vmem:[%s6237_s5 + $0x458] ss:$24 sps:$4 sm:$0xff]  }
 0x353   : > { %3024 = vmatprep.subr.bf16.mxu1 %v4387_v17  ;;  %3065 = vmatprep.subr.bf16.mxu0 %v4390_v18  ;;  %v4460_v18 = vld [vmem:[%s6237_s5 + $0x758] ss:$24 sps:$4 sm:$0xff]  }
 0x356   : > { %3025 = vmatpush1.bf16.msra.mxu1 %v4385_v19  ;;  %3066 = vmatpush1.bf16.msra.mxu0 %v4388_v20  ;;  %v4465_v19 = vld [vmem:[%s6237_s5 + $0x42c] ss:$24 sps:$4 sm:$0xff]  }
 0x357   : > { %3026 = vmatprep.subr.bf16.mxu1 %v4393_v21  ;;  %3067 = vmatprep.subr.bf16.mxu0 %v4396_v22  ;;  %v4468_v20 = vld [vmem:[%s6237_s5 + $0x72c] ss:$24 sps:$4 sm:$0xff]   ;;  %v4463_v21 = vld [vmem:[%s6237_s5 + $0x428] ss:$24 sps:$4 sm:$0xff]  }
 0x358   : > { %v4466_v22 = vld [vmem:[%s6237_s5 + $0x728] ss:$24 sps:$4 sm:$0xff]  }
 0x35a   : > { %3027 = vmatpush1.bf16.msra.mxu1 %v4391_v23  ;;  %3068 = vmatpush1.bf16.msra.mxu0 %v4394_v24  ;;  %v4471_v23 = vld [vmem:[%s6237_s5 + $0x3fc] ss:$24 sps:$4 sm:$0xff]  }
 0x35b   : > { %3028 = vmatprep.subr.bf16.mxu1 %v4399_v25  ;;  %3069 = vmatprep.subr.bf16.mxu0 %v4402_v26  ;;  %v4474_v24 = vld [vmem:[%s6237_s5 + $0x6fc] ss:$24 sps:$4 sm:$0xff]   ;;  %v4469_v25 = vld [vmem:[%s6237_s5 + $0x3f8] ss:$24 sps:$4 sm:$0xff]  }
 0x35c   : > { %v4472_v26 = vld [vmem:[%s6237_s5 + $0x6f8] ss:$24 sps:$4 sm:$0xff]  }
 0x35d   : > { %v5419_v32 = vpop.f32.mrf.mxu0 }
 0x35e   : > { %3029 = vmatpush1.bf16.msra.mxu1 %v4397_v27  ;;  %3070 = vmatpush1.bf16.msra.mxu0 %v4400_v28  ;;  %v1162_v13 = vadd.f32 %v5419_v32, %v754_v7  ;;  %v4477_v27 = vld [vmem:[%s6237_s5 + $0x3cc] ss:$24 sps:$4 sm:$0xff]   ;;  %v4486_v32 = vld [vmem:[%s6237_s5 + $0x69c] ss:$24 sps:$4 sm:$0xff]  }
 0x35f   : > { %v1163_v35 = vpop.f32.mrf.mxu0  ;;  %3030 = vmatprep.subr.bf16.mxu1 %v4405_v29  ;;  %3071 = vmatprep.subr.bf16.mxu0 %v4408_v30  ;;  %v4480_v28 = vld [vmem:[%s6237_s5 + $0x6cc] ss:$24 sps:$4 sm:$0xff]   ;;  %v4475_v29 = vld [vmem:[%s6237_s5 + $0x3c8] ss:$24 sps:$4 sm:$0xff]  }
 0x360   : > { %v1164_v38 = vadd.f32 %v1163_v35, %v755_v31  ;;  %v5537_v17 = vpack.c.bf16 %v1162_v13, %v1162_v13  ;;  %v4478_v30 = vld [vmem:[%s6237_s5 + $0x6c8] ss:$24 sps:$4 sm:$0xff]   ;;  %v4483_v31 = vld [vmem:[%s6237_s5 + $0x39c] ss:$24 sps:$4 sm:$0xff]   ;;  %v4489_v35 = vld [vmem:[%s6237_s5 + $0x36c] ss:$24 sps:$4 sm:$0xff]  }
 0x361   : > { %v1165_v39 = vpop.f32.mrf.mxu0  ;;  %v4537_v7 = vld [vmem:[%s6237_s5 + $0x4ec] ss:$24 sps:$4 sm:$0xff]   ;;  %v4546_v13 = vld [vmem:[%s6237_s5 + $0x7bc] ss:$24 sps:$4 sm:$0xff]  }
 0x362   : > { %v5433_v40 = vpack.c.bf16 %v1164_v38, %v1164_v38  ;;  %3031 = vmatpush1.bf16.msra.mxu1 %v4403_v33  ;;  %3072 = vmatpush1.bf16.msra.mxu0 %v4406_v34  ;;  %v4481_v33 = vld [vmem:[%s6237_s5 + $0x398] ss:$24 sps:$4 sm:$0xff]   ;;  %v4490_v38 = vld [vmem:[%s6237_s5 + $0x668] ss:$24 sps:$4 sm:$0xff]   ;;  %v4495_v39 = vld [vmem:[%s6237_s5 + $0x33c] ss:$24 sps:$4 sm:$0xff]  }
 0x363   : > { %v1166_v43 = vpop.f32.mrf.mxu0  ;;  %3032 = vmatprep.subr.bf16.mxu1 %v4411_v36  ;;  %3073 = vmatprep.subr.bf16.mxu0 %v4414_v37  ;;  %v4484_v34 = vld [vmem:[%s6237_s5 + $0x698] ss:$24 sps:$4 sm:$0xff]   ;;  %v4492_v36 = vld [vmem:[%s6237_s5 + $0x66c] ss:$24 sps:$4 sm:$0xff]   ;;  %v4487_v37 = vld [vmem:[%s6237_s5 + $0x368] ss:$24 sps:$4 sm:$0xff]  }
 0x364   : > { %3048 = vmatprep.mubr.bf16.mxu1 %v5433_v40  ;;  %v4496_v43 = vld [vmem:[%s6237_s5 + $0x638] ss:$24 sps:$4 sm:$0xff]  }
 0x366   : > { %3033 = vmatpush2.bf16.msra.mxu1 %v4409_v41  ;;  %3074 = vmatpush2.bf16.msra.mxu0 %v4412_v42  ;;  %v4498_v41 = vld [vmem:[%s6237_s5 + $0x63c] ss:$24 sps:$4 sm:$0xff]   ;;  %v4493_v42 = vld [vmem:[%s6237_s5 + $0x338] ss:$24 sps:$4 sm:$0xff]  }
 0x367   : > { %3034 = vmatprep.subr.bf16.mxu1 %v4417_v44  ;;  %3075 = vmatprep.subr.bf16.mxu0 %v4420_v45  ;;  %v4501_v44 = vld [vmem:[%s6237_s5 + $0x30c] ss:$24 sps:$4 sm:$0xff]  }
 0x368   : > { %v4504_v45 = vld [vmem:[%s6237_s5 + $0x60c] ss:$24 sps:$4 sm:$0xff]  }
 0x36a   : > { %3035 = vmatpush2.bf16.msra.mxu1 %v4415_v46  ;;  %3076 = vmatpush2.bf16.msra.mxu0 %v4418_v47  ;;  %v4499_v46 = vld [vmem:[%s6237_s5 + $0x308] ss:$24 sps:$4 sm:$0xff]  }
 0x36b   : > { %3036 = vmatprep.subr.bf16.mxu1 %v4423_v48  ;;  %3077 = vmatprep.subr.bf16.mxu0 %v4426_v50  ;;  %v4502_v47 = vld [vmem:[%s6237_s5 + $0x608] ss:$24 sps:$4 sm:$0xff]   ;;  %v4507_v48 = vld [vmem:[%s6237_s5 + $0x5dc] ss:$24 sps:$4 sm:$0xff]  }
 0x36c   : > { %v4510_v50 = vld [vmem:[%s6237_s5 + $0x8dc] ss:$24 sps:$4 sm:$0xff]  }
 0x36e   : > { %3037 = vmatpush2.bf16.msra.mxu1 %v4421_v51  ;;  %3078 = vmatpush2.bf16.msra.mxu0 %v4424_v52  ;;  %v4505_v51 = vld [vmem:[%s6237_s5 + $0x5d8] ss:$24 sps:$4 sm:$0xff]  }
 0x36f   : > { %3038 = vmatprep.subr.bf16.mxu1 %v4429_v53  ;;  %3079 = vmatprep.subr.bf16.mxu0 %v4432_v54  ;;  %v4508_v52 = vld [vmem:[%s6237_s5 + $0x8d8] ss:$24 sps:$4 sm:$0xff]   ;;  %v4513_v53 = vld [vmem:[%s6237_s5 + $0x5ac] ss:$24 sps:$4 sm:$0xff]  }
 0x370   : > { %v4516_v54 = vld [vmem:[%s6237_s5 + $0x8ac] ss:$24 sps:$4 sm:$0xff]  }
 0x372   : > { %3039 = vmatpush2.bf16.msra.mxu1 %v4427_v55  ;;  %3080 = vmatpush2.bf16.msra.mxu0 %v4430_v56  ;;  %v4511_v55 = vld [vmem:[%s6237_s5 + $0x5a8] ss:$24 sps:$4 sm:$0xff]  }
 0x373   : > { %3040 = vmatprep.subr.bf16.mxu1 %v4435_v57  ;;  %3081 = vmatprep.subr.bf16.mxu0 %v4438_v58  ;;  %v4514_v56 = vld [vmem:[%s6237_s5 + $0x8a8] ss:$24 sps:$4 sm:$0xff]   ;;  %v4519_v57 = vld [vmem:[%s6237_s5 + $0x57c] ss:$24 sps:$4 sm:$0xff]  }
 0x374   : > { %v4522_v58 = vld [vmem:[%s6237_s5 + $0x87c] ss:$24 sps:$4 sm:$0xff]  }
 0x376   : > { %3041 = vmatpush2.bf16.msra.mxu1 %v4433_v59  ;;  %3082 = vmatpush2.bf16.msra.mxu0 %v4436_v60  ;;  %v4517_v59 = vld [vmem:[%s6237_s5 + $0x578] ss:$24 sps:$4 sm:$0xff]  }
 0x377   : > { %3042 = vmatprep.subr.bf16.mxu1 %v4441_v9  ;;  %3083 = vmatprep.subr.bf16.mxu0 %v4444_v12  ;;  %v4520_v60 = vld [vmem:[%s6237_s5 + $0x878] ss:$24 sps:$4 sm:$0xff]   ;;  %v4525_v9 = vld [vmem:[%s6237_s5 + $0x54c] ss:$24 sps:$4 sm:$0xff]  }
 0x378   : > { %v4528_v12 = vld [vmem:[%s6237_s5 + $0x84c] ss:$24 sps:$4 sm:$0xff]  }
 0x37a   : > { %3043 = vmatpush2.bf16.msra.mxu1 %v4439_v1  ;;  %3084 = vmatpush2.bf16.msra.mxu0 %v4442_v2  ;;  %v4523_v1 = vld [vmem:[%s6237_s5 + $0x548] ss:$24 sps:$4 sm:$0xff]  }
 0x37b   : > { %3044 = vmatprep.subr.bf16.mxu1 %v4447_v3  ;;  %3085 = vmatprep.subr.bf16.mxu0 %v4450_v4  ;;  %v4526_v2 = vld [vmem:[%s6237_s5 + $0x848] ss:$24 sps:$4 sm:$0xff]   ;;  %v4531_v3 = vld [vmem:[%s6237_s5 + $0x51c] ss:$24 sps:$4 sm:$0xff]  }
 0x37c   : > { %v4534_v4 = vld [vmem:[%s6237_s5 + $0x81c] ss:$24 sps:$4 sm:$0xff]  }
 0x37e   : > { %3045 = vmatpush2.bf16.msra.mxu1 %v4445_v5  ;;  %3086 = vmatpush2.bf16.msra.mxu0 %v4448_v6  ;;  %v4529_v5 = vld [vmem:[%s6237_s5 + $0x518] ss:$24 sps:$4 sm:$0xff]  }
 0x37f   : > { %3046 = vmatprep.subr.bf16.mxu1 %v4453_v8  ;;  %3087 = vmatprep.subr.bf16.mxu0 %v4456_v10  ;;  %v4532_v6 = vld [vmem:[%s6237_s5 + $0x818] ss:$24 sps:$4 sm:$0xff]   ;;  %v4540_v8 = vld [vmem:[%s6237_s5 + $0x7ec] ss:$24 sps:$4 sm:$0xff]   ;;  %v4535_v10 = vld [vmem:[%s6237_s5 + $0x4e8] ss:$24 sps:$4 sm:$0xff]  }
 0x382   : > { %3047 = vmatpush2.bf16.msra.mxu1 %v4451_v11  ;;  %3088 = vmatpush2.bf16.msra.mxu0 %v4454_v49  ;;  %v4538_v11 = vld [vmem:[%s6237_s5 + $0x7e8] ss:$24 sps:$4 sm:$0xff]   ;;  %v4543_v49 = vld [vmem:[%s6237_s5 + $0x4bc] ss:$24 sps:$4 sm:$0xff]  }
 0x383   : > { %3098 = vmatprep.subr.bf16.mxu1 %v4459_v14  ;;  %3139 = vmatprep.subr.bf16.mxu0 %v4462_v15  ;;  %v4541_v14 = vld [vmem:[%s6237_s5 + $0x4b8] ss:$24 sps:$4 sm:$0xff]  }
 0x384   : > { %v4544_v15 = vld [vmem:[%s6237_s5 + $0x7b8] ss:$24 sps:$4 sm:$0xff]  }
 0x385   : > { %3049 = vmatmul.mubr.bf16.vlgmr.msra.gmra.mxu1 %v5537_v17  ;;  %3090 = vmatmul.mubr.bf16.vlgmr.msra.gmra.mxu0 %v5331_v63 }
 0x386   : > { %3099 = vmatpush1.bf16.msra.mxu1 %v4457_v16  ;;  %3130 = vmatprep.mubr.bf16.mxu1 %v5323_v62  ;;  %v4549_v16 = vld [vmem:[%s6237_s5 + $0x48c] ss:$24 sps:$4 sm:$0xff]  }
 0x387   : > { %3140 = vmatpush1.bf16.msra.mxu0 %v4460_v18  ;;  %3171 = vmatprep.mubr.bf16.mxu0 %v5433_v40  ;;  %v4552_v18 = vld [vmem:[%s6237_s5 + $0x78c] ss:$24 sps:$4 sm:$0xff]  }
 0x388   : > { %3100 = vmatprep.subr.bf16.mxu1 %v4465_v19  ;;  %3141 = vmatprep.subr.bf16.mxu0 %v4468_v20  ;;  %v4547_v19 = vld [vmem:[%s6237_s5 + $0x488] ss:$24 sps:$4 sm:$0xff]  }
 0x389   : > { %v4550_v20 = vld [vmem:[%s6237_s5 + $0x788] ss:$24 sps:$4 sm:$0xff]  }
 0x38a   : > { %3101 = vmatpush1.bf16.msra.mxu1 %v4463_v21  ;;  %v4555_v21 = vld [vmem:[%s6237_s5 + $0x164] ss:$24 sps:$4 sm:$0xff]  }
 0x38b   : > { %3142 = vmatpush1.bf16.msra.mxu0 %v4466_v22  ;;  %3102 = vmatprep.subr.bf16.mxu1 %v4471_v23  ;;  %v4558_v22 = vld [vmem:[%s6237_s5 + $0x464] ss:$24 sps:$4 sm:$0xff]   ;;  %v4553_v23 = vld [vmem:[%s6237_s5 + $0x160] ss:$24 sps:$4 sm:$0xff]  }
 0x38c   : > { %3143 = vmatprep.subr.bf16.mxu0 %v4474_v24  ;;  %v4556_v24 = vld [vmem:[%s6237_s5 + $0x460] ss:$24 sps:$4 sm:$0xff]  }
 0x38e   : > { %3103 = vmatpush1.bf16.msra.mxu1 %v4469_v25  ;;  %v4561_v25 = vld [vmem:[%s6237_s5 + $0x134] ss:$24 sps:$4 sm:$0xff]  }
 0x38f   : > { %3144 = vmatpush1.bf16.msra.mxu0 %v4472_v26  ;;  %3104 = vmatprep.subr.bf16.mxu1 %v4477_v27  ;;  %v4564_v26 = vld [vmem:[%s6237_s5 + $0x434] ss:$24 sps:$4 sm:$0xff]   ;;  %v4559_v27 = vld [vmem:[%s6237_s5 + $0x130] ss:$24 sps:$4 sm:$0xff]  }
 0x390   : > { %3145 = vmatprep.subr.bf16.mxu0 %v4480_v28  ;;  %v4562_v28 = vld [vmem:[%s6237_s5 + $0x430] ss:$24 sps:$4 sm:$0xff]  }
 0x392   : > { %3105 = vmatpush1.bf16.msra.mxu1 %v4475_v29  ;;  %v4567_v29 = vld [vmem:[%s6237_s5 + $0x104] ss:$24 sps:$4 sm:$0xff]  }
 0x393   : > { %3146 = vmatpush1.bf16.msra.mxu0 %v4478_v30  ;;  %3106 = vmatprep.subr.bf16.mxu1 %v4483_v31  ;;  %v4570_v30 = vld [vmem:[%s6237_s5 + $0x404] ss:$24 sps:$4 sm:$0xff]   ;;  %v4568_v31 = vld [vmem:[%s6237_s5 + $0x400] ss:$24 sps:$4 sm:$0xff]  }
 0x394   : > { %3147 = vmatprep.subr.bf16.mxu0 %v4486_v32  ;;  %v4576_v32 = vld [vmem:[%s6237_s5 + $0x3d4] ss:$24 sps:$4 sm:$0xff]  }
 0x396   : > { %3107 = vmatpush1.bf16.msra.mxu1 %v4481_v33  ;;  %v4571_v33 = vld [vmem:[%s6237_s5 + $0xd0] ss:$24 sps:$4 sm:$0xff]  }
 0x397   : > { %3148 = vmatpush1.bf16.msra.mxu0 %v4484_v34  ;;  %3108 = vmatprep.subr.bf16.mxu1 %v4489_v35  ;;  %v4574_v34 = vld [vmem:[%s6237_s5 + $0x3d0] ss:$24 sps:$4 sm:$0xff]   ;;  %v4579_v35 = vld [vmem:[%s6237_s5 + $0xa4] ss:$24 sps:$4 sm:$0xff]  }
 0x398   : > { %3149 = vmatprep.subr.bf16.mxu0 %v4492_v36  ;;  %v4582_v36 = vld [vmem:[%s6237_s5 + $0x3a4] ss:$24 sps:$4 sm:$0xff]  }
 0x39a   : > { %3109 = vmatpush1.bf16.msra.mxu1 %v4487_v37  ;;  %v4577_v37 = vld [vmem:[%s6237_s5 + $0xa0] ss:$24 sps:$4 sm:$0xff]  }
 0x39b   : > { %3150 = vmatpush1.bf16.msra.mxu0 %v4490_v38  ;;  %3110 = vmatprep.subr.bf16.mxu1 %v4495_v39  ;;  %v4580_v38 = vld [vmem:[%s6237_s5 + $0x3a0] ss:$24 sps:$4 sm:$0xff]   ;;  %v4585_v39 = vld [vmem:[%s6237_s5 + $0x74] ss:$24 sps:$4 sm:$0xff]  }
 0x39c   : > { %3151 = vmatprep.subr.bf16.mxu0 %v4498_v41  ;;  %v4588_v41 = vld [vmem:[%s6237_s5 + $0x374] ss:$24 sps:$4 sm:$0xff]  }
 0x39e   : > { %3111 = vmatpush1.bf16.msra.mxu1 %v4493_v42  ;;  %v4583_v42 = vld [vmem:[%s6237_s5 + $0x70] ss:$24 sps:$4 sm:$0xff]  }
 0x39f   : > { %3152 = vmatpush1.bf16.msra.mxu0 %v4496_v43  ;;  %3112 = vmatprep.subr.bf16.mxu1 %v4501_v44  ;;  %v4586_v43 = vld [vmem:[%s6237_s5 + $0x370] ss:$24 sps:$4 sm:$0xff]   ;;  %v4591_v44 = vld [vmem:[%s6237_s5 + $0x44] ss:$24 sps:$4 sm:$0xff]  }
 0x3a0   : > { %3153 = vmatprep.subr.bf16.mxu0 %v4504_v45  ;;  %v4594_v45 = vld [vmem:[%s6237_s5 + $0x344] ss:$24 sps:$4 sm:$0xff]  }
 0x3a2   : > { %3113 = vmatpush1.bf16.msra.mxu1 %v4499_v46  ;;  %v4589_v46 = vld [vmem:[%s6237_s5 + $0x40] ss:$24 sps:$4 sm:$0xff]  }
 0x3a3   : > { %3154 = vmatpush1.bf16.msra.mxu0 %v4502_v47  ;;  %3114 = vmatprep.subr.bf16.mxu1 %v4507_v48  ;;  %v4592_v47 = vld [vmem:[%s6237_s5 + $0x340] ss:$24 sps:$4 sm:$0xff]   ;;  %v4597_v48 = vld [vmem:[%s6237_s5 + $0x14] ss:$24 sps:$4 sm:$0xff]  }
 0x3a4   : > { %3155 = vmatprep.subr.bf16.mxu0 %v4510_v50  ;;  %v4600_v50 = vld [vmem:[%s6237_s5 + $0x314] ss:$24 sps:$4 sm:$0xff]  }
 0x3a6   : > { %3115 = vmatpush2.bf16.msra.mxu1 %v4505_v51  ;;  %v4595_v51 = vld [vmem:[%s6237_s5 + $0x10] ss:$24 sps:$4 sm:$0xff]  }
 0x3a7   : > { %3156 = vmatpush2.bf16.msra.mxu0 %v4508_v52  ;;  %3116 = vmatprep.subr.bf16.mxu1 %v4513_v53  ;;  %v4598_v52 = vld [vmem:[%s6237_s5 + $0x310] ss:$24 sps:$4 sm:$0xff]   ;;  %v4603_v53 = vld [vmem:[%s6237_s5 + $0x2e4] ss:$24 sps:$4 sm:$0xff]  }
 0x3a8   : > { %3157 = vmatprep.subr.bf16.mxu0 %v4516_v54  ;;  %v4606_v54 = vld [vmem:[%s6237_s5 + $0x5e4] ss:$24 sps:$4 sm:$0xff]  }
 0x3aa   : > { %3117 = vmatpush2.bf16.msra.mxu1 %v4511_v55  ;;  %v4601_v55 = vld [vmem:[%s6237_s5 + $0x2e0] ss:$24 sps:$4 sm:$0xff]  }
 0x3ab   : > { %3158 = vmatpush2.bf16.msra.mxu0 %v4514_v56  ;;  %3118 = vmatprep.subr.bf16.mxu1 %v4519_v57  ;;  %v4604_v56 = vld [vmem:[%s6237_s5 + $0x5e0] ss:$24 sps:$4 sm:$0xff]   ;;  %v4609_v57 = vld [vmem:[%s6237_s5 + $0x2b4] ss:$24 sps:$4 sm:$0xff]  }
 0x3ac   : > { %3159 = vmatprep.subr.bf16.mxu0 %v4522_v58  ;;  %v4612_v58 = vld [vmem:[%s6237_s5 + $0x5b4] ss:$24 sps:$4 sm:$0xff]  }
 0x3ae   : > { %3119 = vmatpush2.bf16.msra.mxu1 %v4517_v59  ;;  %v4607_v59 = vld [vmem:[%s6237_s5 + $0x2b0] ss:$24 sps:$4 sm:$0xff]  }
 0x3af   : > { %3160 = vmatpush2.bf16.msra.mxu0 %v4520_v60  ;;  %3120 = vmatprep.subr.bf16.mxu1 %v4525_v9  ;;  %v4610_v60 = vld [vmem:[%s6237_s5 + $0x5b0] ss:$24 sps:$4 sm:$0xff]   ;;  %v4615_v9 = vld [vmem:[%s6237_s5 + $0x284] ss:$24 sps:$4 sm:$0xff]  }
 0x3b0   : > { %3161 = vmatprep.subr.bf16.mxu0 %v4528_v12  ;;  %v4618_v12 = vld [vmem:[%s6237_s5 + $0x584] ss:$24 sps:$4 sm:$0xff]  }
 0x3b2   : > { %3121 = vmatpush2.bf16.msra.mxu1 %v4523_v1  ;;  %v4613_v1 = vld [vmem:[%s6237_s5 + $0x280] ss:$24 sps:$4 sm:$0xff]  }
 0x3b3   : > { %3162 = vmatpush2.bf16.msra.mxu0 %v4526_v2  ;;  %3122 = vmatprep.subr.bf16.mxu1 %v4531_v3  ;;  %v4616_v2 = vld [vmem:[%s6237_s5 + $0x580] ss:$24 sps:$4 sm:$0xff]   ;;  %v4621_v3 = vld [vmem:[%s6237_s5 + $0x254] ss:$24 sps:$4 sm:$0xff]  }
 0x3b4   : > { %3163 = vmatprep.subr.bf16.mxu0 %v4534_v4  ;;  %v4624_v4 = vld [vmem:[%s6237_s5 + $0x554] ss:$24 sps:$4 sm:$0xff]  }
 0x3b6   : > { %3123 = vmatpush2.bf16.msra.mxu1 %v4529_v5  ;;  %v4619_v5 = vld [vmem:[%s6237_s5 + $0x250] ss:$24 sps:$4 sm:$0xff]  }
 0x3b7   : > { %3164 = vmatpush2.bf16.msra.mxu0 %v4532_v6  ;;  %3124 = vmatprep.subr.bf16.mxu1 %v4537_v7  ;;  %v4622_v6 = vld [vmem:[%s6237_s5 + $0x550] ss:$24 sps:$4 sm:$0xff]   ;;  %v4627_v7 = vld [vmem:[%s6237_s5 + $0x224] ss:$24 sps:$4 sm:$0xff]  }
 0x3b8   : > { %3165 = vmatprep.subr.bf16.mxu0 %v4540_v8  ;;  %v4630_v8 = vld [vmem:[%s6237_s5 + $0x524] ss:$24 sps:$4 sm:$0xff]  }
 0x3ba   : > { %3125 = vmatpush2.bf16.msra.mxu1 %v4535_v10  ;;  %v4625_v10 = vld [vmem:[%s6237_s5 + $0x220] ss:$24 sps:$4 sm:$0xff]  }
 0x3bb   : > { %3166 = vmatpush2.bf16.msra.mxu0 %v4538_v11  ;;  %3126 = vmatprep.subr.bf16.mxu1 %v4543_v49  ;;  %v4628_v11 = vld [vmem:[%s6237_s5 + $0x520] ss:$24 sps:$4 sm:$0xff]   ;;  %v4633_v49 = vld [vmem:[%s6237_s5 + $0x1f4] ss:$24 sps:$4 sm:$0xff]  }
 0x3bc   : > { %3167 = vmatprep.subr.bf16.mxu0 %v4546_v13  ;;  %v4636_v13 = vld [vmem:[%s6237_s5 + $0x4f4] ss:$24 sps:$4 sm:$0xff]  }
 0x3be   : > { %3127 = vmatpush2.bf16.msra.mxu1 %v4541_v14  ;;  %v4631_v14 = vld [vmem:[%s6237_s5 + $0x1f0] ss:$24 sps:$4 sm:$0xff]  }
 0x3bf   : > { %3168 = vmatpush2.bf16.msra.mxu0 %v4544_v15  ;;  %3128 = vmatprep.subr.bf16.mxu1 %v4549_v16  ;;  %v1464_v15 = vlaneseq  ;;  %v4634_v16 = vld [vmem:[%s6237_s5 + $0x4f0] ss:$24 sps:$4 sm:$0xff]  }
 0x3c0   : > { %3169 = vmatprep.subr.bf16.mxu0 %v4552_v18  ;;  %v4639_v18 = vld [vmem:[%s6237_s5 + $0x1c4] ss:$24 sps:$4 sm:$0xff]  }
 0x3c2   : > { %3129 = vmatpush2.bf16.msra.mxu1 %v4547_v19  ;;  %v4642_v19 = vld [vmem:[%s6237_s5 + $0x4c4] ss:$24 sps:$4 sm:$0xff]  }
 0x3c3   : > { %3170 = vmatpush2.bf16.msra.mxu0 %v4550_v20  ;;  %3180 = vmatprep.subr.bf16.mxu1 %v4555_v21  ;;  %v4637_v20 = vld [vmem:[%s6237_s5 + $0x1c0] ss:$24 sps:$4 sm:$0xff]   ;;  %v5907_v21 = vshrl.u32 %v1464_v15, 7 }
 0x3c4   : > { %3221 = vmatprep.subr.bf16.mxu0 %v4558_v22  ;;  %v4640_v22 = vld [vmem:[%s6237_s5 + $0x4c0] ss:$24 sps:$4 sm:$0xff]  }
 0x3c5   : > { %3131 = vmatmul.mubr.bf16.vlgmr.msra.gmra.mxu1 %v5333_v0 }
 0x3c6   : > { %3172 = vmatmul.mubr.bf16.vlgmr.msra.gmra.mxu0 %v5537_v17  ;;  %3181 = vmatpush1.bf16.msra.mxu1 %v4553_v23  ;;  %v4645_v23 = vld [vmem:[%s6237_s5 + $0x194] ss:$24 sps:$4 sm:$0xff]  }
 0x3c7   : > { %3212 = vmatprep.mubr.bf16.mxu1 %v5321_v61  ;;  %3222 = vmatpush1.bf16.msra.mxu0 %v4556_v24  ;;  %v4565_v61 = vld [vmem:[%s6237_s5 + $0x100] ss:$24 sps:$4 sm:$0xff]   ;;  %v4648_v24 = vld [vmem:[%s6237_s5 + $0x494] ss:$24 sps:$4 sm:$0xff]  }
 0x3c8   : > { %3253 = vmatprep.mubr.bf16.mxu0 %v5323_v62  ;;  %3182 = vmatprep.subr.bf16.mxu1 %v4561_v25  ;;  %v4573_v62 = vld [vmem:[%s6237_s5 + $0xd4] ss:$24 sps:$4 sm:$0xff]   ;;  %v4643_v25 = vld [vmem:[%s6237_s5 + $0x190] ss:$24 sps:$4 sm:$0xff]  }
 0x3c9   : > { %3223 = vmatprep.subr.bf16.mxu0 %v4564_v26  ;;  %v5922_v26 = vsub.s32 0, %v5907_v21 }
 0x3ca   : > { %3183 = vmatpush1.bf16.msra.mxu1 %v4559_v27  ;;  %v4646_v27 = vld [vmem:[%s6237_s5 + $0x490] ss:$24 sps:$4 sm:$0xff]  }
 0x3cb   : > { %3224 = vmatpush1.bf16.msra.mxu0 %v4562_v28  ;;  %3184 = vmatprep.subr.bf16.mxu1 %v4567_v29  ;;  %v4651_v28 = vld [vmem:[%s6237_s5 + $0x764] ss:$24 sps:$4 sm:$0xff]  }
 0x3cc   : > { %3225 = vmatprep.subr.bf16.mxu0 %v4570_v30  ;;  %v5933_v29 = vld [vmem:[%s6215_s6] sm:$0x3f]  ;;  %v5936_v30 = vsub.s32 1, %v5907_v21 }
 0x3ce   : > { %3185 = vmatpush1.bf16.msra.mxu1 %v4565_v61  ;;  %v4649_v61 = vld [vmem:[%s6237_s5 + $0x760] ss:$24 sps:$4 sm:$0xff]  }
 0x3cf   : > { %3226 = vmatpush1.bf16.msra.mxu0 %v4568_v31  ;;  %3186 = vmatprep.subr.bf16.mxu1 %v4573_v62  ;;  %v1467_v31 = vrot.slane %v5933_v29, %v5922_v26  ;;  %v4654_v62 = vld [vmem:[%s6237_s5 + $0x734] ss:$24 sps:$4 sm:$0xff]  }
 0x3d0   : > { %3227 = vmatprep.subr.bf16.mxu0 %v4576_v32  ;;  %v1471_v32 = vrot.slane %v5933_v29, %v5936_v30 }
 0x3d2   : > { %3187 = vmatpush1.bf16.msra.mxu1 %v4571_v33 }
 0x3d3   : > { %3228 = vmatpush1.bf16.msra.mxu0 %v4574_v34  ;;  %3188 = vmatprep.subr.bf16.mxu1 %v4579_v35 }
 0x3d4   : > { %3229 = vmatprep.subr.bf16.mxu0 %v4582_v36  ;;  %v4652_v36 = vld [vmem:[%s6237_s5 + $0x730] ss:$24 sps:$4 sm:$0xff]  }
 0x3d6   : > { %3189 = vmatpush1.bf16.msra.mxu1 %v4577_v37 }
 0x3d7   : > { %3230 = vmatpush1.bf16.msra.mxu0 %v4580_v38  ;;  %3190 = vmatprep.subr.bf16.mxu1 %v4585_v39  ;;  %v4657_v39 = vld [vmem:[%s6237_s5 + $0x704] ss:$24 sps:$4 sm:$0xff]  }
 0x3d8   : > { %3231 = vmatprep.subr.bf16.mxu0 %v4588_v41 }
 0x3da   : > { %3191 = vmatpush1.bf16.msra.mxu1 %v4583_v42 }
 0x3db   : > { %3232 = vmatpush1.bf16.msra.mxu0 %v4586_v43  ;;  %3192 = vmatprep.subr.bf16.mxu1 %v4591_v44  ;;  %v4655_v44 = vld [vmem:[%s6237_s5 + $0x700] ss:$24 sps:$4 sm:$0xff]  }
 0x3dc   : > { %3233 = vmatprep.subr.bf16.mxu0 %v4594_v45 }
 0x3de   : > { %3193 = vmatpush1.bf16.msra.mxu1 %v4589_v46  ;;  %v4660_v46 = vld [vmem:[%s6237_s5 + $0x6d4] ss:$24 sps:$4 sm:$0xff]  }
 0x3df   : > { %3234 = vmatpush1.bf16.msra.mxu0 %v4592_v47  ;;  %3194 = vmatprep.subr.bf16.mxu1 %v4597_v48  ;;  %v4658_v47 = vld [vmem:[%s6237_s5 + $0x6d0] ss:$24 sps:$4 sm:$0xff]   ;;  %v4663_v48 = vld [vmem:[%s6237_s5 + $0x6a4] ss:$24 sps:$4 sm:$0xff]  }
 0x3e0   : > { %3235 = vmatprep.subr.bf16.mxu0 %v4600_v50  ;;  %v4661_v50 = vld [vmem:[%s6237_s5 + $0x6a0] ss:$24 sps:$4 sm:$0xff]  }
 0x3e2   : > { %3195 = vmatpush1.bf16.msra.mxu1 %v4595_v51  ;;  %v4666_v51 = vld [vmem:[%s6237_s5 + $0x674] ss:$24 sps:$4 sm:$0xff]  }
 0x3e3   : > { %3236 = vmatpush1.bf16.msra.mxu0 %v4598_v52  ;;  %3196 = vmatprep.subr.bf16.mxu1 %v4603_v53  ;;  %v4664_v52 = vld [vmem:[%s6237_s5 + $0x670] ss:$24 sps:$4 sm:$0xff]   ;;  %v4669_v53 = vld [vmem:[%s6237_s5 + $0x644] ss:$24 sps:$4 sm:$0xff]  }
 0x3e4   : > { %3237 = vmatprep.subr.bf16.mxu0 %v4606_v54  ;;  %v4667_v54 = vld [vmem:[%s6237_s5 + $0x640] ss:$24 sps:$4 sm:$0xff]  }
 0x3e6   : > { %3197 = vmatpush2.bf16.msra.mxu1 %v4601_v55  ;;  %v4672_v55 = vld [vmem:[%s6237_s5 + $0x614] ss:$24 sps:$4 sm:$0xff]  }
 0x3e7   : > { %3238 = vmatpush2.bf16.msra.mxu0 %v4604_v56  ;;  %3198 = vmatprep.subr.bf16.mxu1 %v4609_v57  ;;  %v4670_v56 = vld [vmem:[%s6237_s5 + $0x610] ss:$24 sps:$4 sm:$0xff]   ;;  %v4675_v57 = vld [vmem:[%s6237_s5 + $0x8e4] ss:$24 sps:$4 sm:$0xff]  }
 0x3e8   : > { %3239 = vmatprep.subr.bf16.mxu0 %v4612_v58  ;;  %v4673_v58 = vld [vmem:[%s6237_s5 + $0x8e0] ss:$24 sps:$4 sm:$0xff]  }
 0x3ea   : > { %3199 = vmatpush2.bf16.msra.mxu1 %v4607_v59  ;;  %v4678_v59 = vld [vmem:[%s6237_s5 + $0x8b4] ss:$24 sps:$4 sm:$0xff]  }
 0x3eb   : > { %3240 = vmatpush2.bf16.msra.mxu0 %v4610_v60  ;;  %3200 = vmatprep.subr.bf16.mxu1 %v4615_v9  ;;  %v4676_v60 = vld [vmem:[%s6237_s5 + $0x8b0] ss:$24 sps:$4 sm:$0xff]   ;;  %v4681_v9 = vld [vmem:[%s6237_s5 + $0x884] ss:$24 sps:$4 sm:$0xff]  }
 0x3ec   : > { %3241 = vmatprep.subr.bf16.mxu0 %v4618_v12  ;;  %v4679_v12 = vld [vmem:[%s6237_s5 + $0x880] ss:$24 sps:$4 sm:$0xff]  }
 0x3ee   : > { %3201 = vmatpush2.bf16.msra.mxu1 %v4613_v1  ;;  %v4684_v1 = vld [vmem:[%s6237_s5 + $0x854] ss:$24 sps:$4 sm:$0xff]  }
 0x3ef   : > { %3242 = vmatpush2.bf16.msra.mxu0 %v4616_v2  ;;  %3202 = vmatprep.subr.bf16.mxu1 %v4621_v3  ;;  %v4682_v2 = vld [vmem:[%s6237_s5 + $0x850] ss:$24 sps:$4 sm:$0xff]   ;;  %v4687_v3 = vld [vmem:[%s6237_s5 + $0x824] ss:$24 sps:$4 sm:$0xff]  }
 0x3f0   : > { %3243 = vmatprep.subr.bf16.mxu0 %v4624_v4  ;;  %v4685_v4 = vld [vmem:[%s6237_s5 + $0x820] ss:$24 sps:$4 sm:$0xff]  }
 0x3f2   : > { %3203 = vmatpush2.bf16.msra.mxu1 %v4619_v5  ;;  %v4690_v5 = vld [vmem:[%s6237_s5 + $0x7f4] ss:$24 sps:$4 sm:$0xff]  }
 0x3f3   : > { %3244 = vmatpush2.bf16.msra.mxu0 %v4622_v6  ;;  %3204 = vmatprep.subr.bf16.mxu1 %v4627_v7  ;;  %v4688_v6 = vld [vmem:[%s6237_s5 + $0x7f0] ss:$24 sps:$4 sm:$0xff]   ;;  %v4693_v7 = vld [vmem:[%s6237_s5 + $0x7c4] ss:$24 sps:$4 sm:$0xff]  }
 0x3f4   : > { %3245 = vmatprep.subr.bf16.mxu0 %v4630_v8  ;;  %v4691_v8 = vld [vmem:[%s6237_s5 + $0x7c0] ss:$24 sps:$4 sm:$0xff]  }
 0x3f6   : > { %3205 = vmatpush2.bf16.msra.mxu1 %v4625_v10  ;;  %v4696_v10 = vld [vmem:[%s6237_s5 + $0x794] ss:$24 sps:$4 sm:$0xff]  }
 0x3f7   : > { %3246 = vmatpush2.bf16.msra.mxu0 %v4628_v11  ;;  %3206 = vmatprep.subr.bf16.mxu1 %v4633_v49  ;;  %v4694_v11 = vld [vmem:[%s6237_s5 + $0x790] ss:$24 sps:$4 sm:$0xff]   ;;  %s4724_s5 = scalar_lea.vmem %s4723_s4, 128 }
 0x3f8   : > { %3247 = vmatprep.subr.bf16.mxu0 %v4636_v13  ;;  %p4726_p1 = scmp.lt.s32.totalorder %s4724_s5, %s4718_s1 }
 0x3fa   : > { %3207 = vmatpush2.bf16.msra.mxu1 %v4631_v14  ;;  %p4727_p2 = por %p4726_p1, %p4725_p0 }
 0x3fb   : > { %3248 = vmatpush2.bf16.msra.mxu0 %v4634_v16  ;;  %3208 = vmatprep.subr.bf16.mxu1 %v4639_v18 }
 0x3fc   : > { %3249 = vmatprep.subr.bf16.mxu0 %v4642_v19  ;;  %p4728_p3 = pnand %p4727_p2, %p4721_p13 }
 0x3fe   : > { %3209 = vmatpush2.bf16.msra.mxu1 %v4637_v20 }
 0x3ff   : > { %3250 = vmatpush2.bf16.msra.mxu0 %v4640_v22  ;;  %3210 = vmatprep.subr.bf16.mxu1 %v4645_v23 }
 0x400   : > { %3251 = vmatprep.subr.bf16.mxu0 %v4648_v24  ;;  %v6046_v24 = vsub.s32 2, %v5907_v21 }
 0x402   : > { %3211 = vmatpush2.bf16.msra.mxu1 %v4643_v25  ;;  %v6049_v25 = vsub.s32 3, %v5907_v21 }
 0x403   : > { %3252 = vmatpush2.bf16.msra.mxu0 %v4646_v27  ;;  %3262 = vmatprep.subr.bf16.mxu1 %v4651_v28  ;;  %v1475_v27 = vrot.slane %v5933_v29, %v6046_v24 }
 0x405   : > { %3213 = vmatmul.mubr.bf16.vlgmr.msra.gmra.mxu1 %v5331_v63  ;;  %v2968_v33 = vpop.f32.mrf.mxu1  ;;  %v3009_v34 = vpop.f32.mrf.mxu0 }
 0x406   : > { %3254 = vmatmul.mubr.bf16.vlgmr.msra.gmra.mxu0 %v5333_v0  ;;  %v2969_v35 = vadd.f32 %v2968_v33, %v1467_v31  ;;  %3263 = vmatpush1.bf16.msra.mxu1 %v4649_v61 }
 0x407   : > { %3294 = vmatprep.mubr.bf16.mxu1 %v5433_v40  ;;  %v2970_v37 = vpop.f32.mrf.mxu1  ;;  %v3011_v38 = vpop.f32.mrf.mxu0  ;;  %3264 = vmatprep.subr.bf16.mxu1 %v4654_v62 }
 0x408   : > { %v5957_v63 = vadd.f32 %v3009_v34, %v2969_v35  ;;  %v2971_v41 = vadd.f32 %v2970_v37, %v1471_v32 }
 0x409   : > { %v2972_v42 = vpop.f32.mrf.mxu1  ;;  %v3013_v0 = vpop.f32.mrf.mxu0 }
 0x40a   : > { %v5959_v43 = vadd.f32 %v3011_v38, %v2971_v41  ;;  %3265 = vmatpush1.bf16.msra.mxu1 %v4652_v36 }
 0x40b   : > { %v2973_v40 = vpop.f32.mrf.mxu1  ;;  %v3014_v45 = vpop.f32.mrf.mxu0  ;;  %3266 = vmatprep.subr.bf16.mxu1 %v4657_v39 }
 0x40e   : > { %3267 = vmatpush1.bf16.msra.mxu1 %v4655_v44 }
 0x40f   : > { %3268 = vmatprep.subr.bf16.mxu1 %v4660_v46 }
 0x412   : > { %3269 = vmatpush1.bf16.msra.mxu1 %v4658_v47 }
 0x413   : > { %3270 = vmatprep.subr.bf16.mxu1 %v4663_v48  ;;  %v6056_v48 = vsub.s32 4, %v5907_v21 }
 0x416   : > { %3271 = vmatpush1.bf16.msra.mxu1 %v4661_v50  ;;  %v6059_v50 = vsub.s32 5, %v5907_v21 }
 0x417   : > { %3272 = vmatprep.subr.bf16.mxu1 %v4666_v51  ;;  %v1483_v51 = vrot.slane %v5933_v29, %v6056_v48 }
 0x41a   : > { %3273 = vmatpush1.bf16.msra.mxu1 %v4664_v52  ;;  %v1487_v52 = vrot.slane %v5933_v29, %v6059_v50 }
 0x41b   : > { %3274 = vmatprep.subr.bf16.mxu1 %v4669_v53 }
 0x41e   : > { %3275 = vmatpush1.bf16.msra.mxu1 %v4667_v54 }
 0x41f   : > { %3276 = vmatprep.subr.bf16.mxu1 %v4672_v55 }
 0x422   : > { %3277 = vmatpush1.bf16.msra.mxu1 %v4670_v56 }
 0x423   : > { %3278 = vmatprep.subr.bf16.mxu1 %v4675_v57 }
 0x426   : > { %3279 = vmatpush2.bf16.msra.mxu1 %v4673_v58 }
 0x427   : > { %3280 = vmatprep.subr.bf16.mxu1 %v4678_v59 }
 0x42a   : > { %3281 = vmatpush2.bf16.msra.mxu1 %v4676_v60 }
 0x42b   : > { %3282 = vmatprep.subr.bf16.mxu1 %v4681_v9 }
 0x42e   : > { %3283 = vmatpush2.bf16.msra.mxu1 %v4679_v12 }
 0x42f   : > { %3284 = vmatprep.subr.bf16.mxu1 %v4684_v1 }
 0x432   : > { %3285 = vmatpush2.bf16.msra.mxu1 %v4682_v2 }
 0x433   : > { %3286 = vmatprep.subr.bf16.mxu1 %v4687_v3 }
 0x436   : > { %3287 = vmatpush2.bf16.msra.mxu1 %v4685_v4 }
 0x437   : > { %3288 = vmatprep.subr.bf16.mxu1 %v4690_v5 }
 0x43a   : > { %3289 = vmatpush2.bf16.msra.mxu1 %v4688_v6 }
 0x43b   : > { %3290 = vmatprep.subr.bf16.mxu1 %v4693_v7 }
 0x43e   : > { %3291 = vmatpush2.bf16.msra.mxu1 %v4691_v8 }
 0x43f   : > { %3292 = vmatprep.subr.bf16.mxu1 %v4696_v10 }
 0x442   : > { %3293 = vmatpush2.bf16.msra.mxu1 %v4694_v11 }
 0x445   : > { %v3050_v49 = vpop.f32.mrf.mxu1  ;;  %v3091_v13 = vpop.f32.mrf.mxu0  ;;  %3295 = vmatmul.mubr.bf16.vlgmr.msra.gmra.mxu1 %v5537_v17  ;;  %v1479_v17 = vrot.slane %v5933_v29, %v6049_v25 }
 0x446   : > { %v3051_v14 = vadd.f32 %v3050_v49, %v5957_v63  ;;  %v3092_v28 = vadd.f32 %v3091_v13, %v1475_v27 }
 0x447   : > { %v3052_v15 = vpop.f32.mrf.mxu1  ;;  %v3093_v16 = vpop.f32.mrf.mxu0 }
 0x448   : > { %v3053_v18 = vadd.f32 %v3052_v15, %v5959_v43  ;;  %v3094_v31 = vadd.f32 %v3093_v16, %v1479_v17 }
 0x449   : > { %v3054_v19 = vpop.f32.mrf.mxu1  ;;  %v3095_v20 = vpop.f32.mrf.mxu0 }
 0x44a   : > { %v3303_v53 = vadd.f32 %v3053_v18, %v3051_v14 }
 0x44b   : > { %v3055_v22 = vpop.f32.mrf.mxu1  ;;  %v3096_v23 = vpop.f32.mrf.mxu0 }
 0x485   : > { %v3132_v61 = vpop.f32.mrf.mxu1 }
 0x486   : > { %v3133_v62 = vadd.f32 %v3132_v61, %v3092_v28  ;;  %v3173_v32 = vpop.f32.mrf.mxu0 }
 0x487   : > { %v3134_v33 = vpop.f32.mrf.mxu1 }
 0x488   : > { %v3174_v34 = vadd.f32 %v3173_v32, %v3133_v62  ;;  %v3135_v35 = vadd.f32 %v3134_v33, %v3094_v31  ;;  %v3175_v36 = vpop.f32.mrf.mxu0 }
 0x489   : > { %v3136_v37 = vpop.f32.mrf.mxu1 }
 0x48a   : > { %v3176_v38 = vadd.f32 %v3175_v36, %v3135_v35  ;;  %v3177_v39 = vpop.f32.mrf.mxu0  ;;  %v3304_v55 = vadd.f32 %v3303_v53, %v3174_v34 }
 0x48b   : > { %v3137_v63 = vpop.f32.mrf.mxu1 }
 0x48c   : > { %v3178_v41 = vpop.f32.mrf.mxu0  ;;  %v3305_v59 = vadd.f32 %v3304_v55, %v3176_v38 }
 0x4c5   : > { %v3214_v42 = vpop.f32.mrf.mxu1 }
 0x4c6   : > { %v3255_v0 = vpop.f32.mrf.mxu0  ;;  %v3215_v54 = vadd.f32 %v3214_v42, %v1483_v51 }
 0x4c7   : > { %v3216_v43 = vpop.f32.mrf.mxu1 }
 0x4c8   : > { %v3257_v44 = vpop.f32.mrf.mxu0  ;;  %v3217_v56 = vadd.f32 %v3216_v43, %v1487_v52  ;;  %v3256_v57 = vadd.f32 %v3255_v0, %v3215_v54 }
 0x4c9   : > { %v3218_v40 = vpop.f32.mrf.mxu1 }
 0x4ca   : > { %v3259_v45 = vpop.f32.mrf.mxu0  ;;  %v3258_v60 = vadd.f32 %v3257_v44, %v3217_v56 }
 0x4cb   : > { %v3219_v46 = vpop.f32.mrf.mxu1 }
 0x4cc   : > { %v3260_v47 = vpop.f32.mrf.mxu0 }
 0x505   : > { %v3296_v58 = vpop.f32.mrf.mxu1 }
 0x506   : > { %v3297_v9 = vadd.f32 %v3296_v58, %v3256_v57 }
 0x507   : > { %v3298_v12 = vpop.f32.mrf.mxu1 }
 0x508   : > { %v3299_v1 = vadd.f32 %v3298_v12, %v3258_v60  ;;  %v3306_v2 = vadd.f32 %v3305_v59, %v3297_v9 }
 0x509   : > { %v3300_v21 = vpop.f32.mrf.mxu1 }
 0x50a   : > { %v3307_v3 = vadd.f32 %v3306_v2, %v3299_v1 }
 0x50b   : > { %v3301_v4 = vpop.f32.mrf.mxu1 }
 0x50c   : > { %3308 = vadd.xlane.f32.xlu1 %v3307_v3 }
 0x595   : > { %v3309_v5 = vpop.xlane.xlu1 %3308 }
 0x596   : > { %v3311_v6 = vmul.f32 0.0013020834, %v3309_v5 }
 0x598   : > { %v6065_v7 = vsub.f32 %v3051_v14, %v3311_v6  ;;  %v6067_v29 = vsub.f32 %v3053_v18, %v3311_v6  ;;  %v6069_v8 = vsub.f32 %v3174_v34, %v3311_v6  ;;  %v6071_v10 = vsub.f32 %v3176_v38, %v3311_v6 }
 0x599   : > { %v6077_v13 = vsub.f32 %v3297_v9, %v3311_v6  ;;  %v6081_v16 = vsub.f32 %v3299_v1, %v3311_v6 }
 0x59a   : > { %v3318_v11 = vmul.f32 %v6065_v7, %v6065_v7  ;;  %v3319_v49 = vmul.f32 %v6067_v29, %v6067_v29  ;;  %v3320_v14 = vmul.f32 %v6069_v8, %v6069_v8  ;;  %v3321_v18 = vmul.f32 %v6071_v10, %v6071_v10 }
 0x59b   : > { %v3322_v20 = vmul.f32 %v6077_v13, %v6077_v13  ;;  %v3323_v23 = vmul.f32 %v6081_v16, %v6081_v16 }
 0x59c   : > { %v3324_v15 = vadd.f32 %v3319_v49, %v3318_v11 }
 0x59e   : > { %v3325_v19 = vadd.f32 %v3324_v15, %v3320_v14 }
 0x5a0   : > { %v3326_v22 = vadd.f32 %v3325_v19, %v3321_v18 }
 0x5a2   : > { %v3327_v27 = vadd.f32 %v3326_v22, %v3322_v20 }
 0x5a4   : > { %v3328_v17 = vadd.f32 %v3327_v27, %v3323_v23 }
 0x5a6   : > { %3329 = vadd.xlane.f32.xlu1 %v3328_v17 }
 0x5a7   : > { %4731 = shalt.err (!%p4728_p3)
}
 0x5a8   : > { %s4732_s23 = scalar_lea.hbm %s3461_s16, 64  ;;  %s4736_s24 = scalar_lea.hbm %s6219_s10, 128 }
 0x5a9   : > { %p4733_p5 = scmp.ne.s32.totalorder %s3461_s16, %s4732_s23  ;;  %p4737_p9 = scmp.lt.s32.totalorder %s3461_s16, %s6219_s10 }
 0x5aa   : > { %p4738_p12 = scmp.lt.s32.totalorder %s4736_s24, %s4732_s23 }
 0x5ab   : > { %p4734_p6 = pnand %p4733_p5, %p4966_p4 }
 0x5ac   : > { %p4739_p10 = por %p4738_p12, %p4737_p9 }
 0x5ad   : > { %p4735_p7 = pneg %p4734_p6 }
 0x5af   : > { %p4740_p11 = pnand %p4739_p10, %p4735_p7 }
 0x5b1   : > { %4743 = shalt.err (!%p4740_p11)
}
 0x5b2   : > { %4106 = dma.vmem_to_hbm [thread:$0]  (%p4966_p4), %s3464_s2, 64, %s3461_s16, %s6097_s26  }
 0x5b3   : > { %s6238_s5 = sshll.u32 %s4846_s20, 6  ;;  %s3477_s13 = sshll.u32 %s5051_s28, 4  ;;  %s3478_s13 = int_to_ptr.vmem [resolvable:$true] %s3477_s13 }
 0x5b4   : > { %s3475_s4 = scalar_lea.hbm %s6220_s11, %s6238_s5  ;;  %s4744_s14 = scalar_lea.vmem %s3478_s13, 64 }
 0x5b5   : > { %p4745_p13 = scmp.ne.s32.totalorder %s3478_s13, %s4744_s14  ;;  %s4861_s23 = smov [#allocation8]  }
 0x5b6   : > { %s4748_s12 = sshll.u32 %s4861_s23, 4  ;;  %s4749_s12 = int_to_ptr.vmem [resolvable:$false] %s4748_s12 }
 0x5b7   : > { %p4746_p0 = pnand %p4745_p13, %p4966_p4  ;;  %s4750_s24 = scalar_lea.vmem %s4749_s12, 128 }
 0x5b8   : > { %p4751_p2 = scmp.lt.s32.totalorder %s3478_s13, %s4749_s12  ;;  %p4752_p3 = scmp.lt.s32.totalorder %s4750_s24, %s4744_s14 }
 0x5b9   : > { %p4747_p1 = pneg %p4746_p0 }
 0x5ba   : > { %p4753_p5 = por %p4752_p3, %p4751_p2 }
 0x5bc   : > { %p4754_p6 = pnand %p4753_p5, %p4747_p1 }
 0x5be   : > { %4757 = shalt.err (!%p4754_p6)
}
 0x5bf   : > { %s4758_s16 = scalar_lea.hbm %s3475_s4, 64  ;;  %s4762_s15 = scalar_lea.hbm %s6220_s11, 128 }
 0x5c0   : > { %p4759_p7 = scmp.ne.s32.totalorder %s3475_s4, %s4758_s16  ;;  %p4763_p10 = scmp.lt.s32.totalorder %s3475_s4, %s6220_s11 }
 0x5c1   : > { %p4764_p11 = scmp.lt.s32.totalorder %s4762_s15, %s4758_s16 }
 0x5c2   : > { %p4760_p9 = pnand %p4759_p7, %p4966_p4 }
 0x5c3   : > { %p4765_p13 = por %p4764_p11, %p4763_p10 }
 0x5c4   : > { %p4761_p12 = pneg %p4760_p9 }
 0x5c6   : > { %p4766_p0 = pnand %p4765_p13, %p4761_p12 }
 0x5c8   : > { %4769 = shalt.err (!%p4766_p0)
}
 0x5c9   : > { %4107 = dma.vmem_to_hbm [thread:$0]  (%p4966_p4), %s3478_s13, 64, %s3475_s4, %s6097_s26   ;;  %v3332_v62 = vld [vmem:[%s6216_s7] sm:$0x3f] }
 0x5ca   : > { %v3378_v32 = vld [vmem:[%s6217_s8] sm:$0x3f]  ;;  %s4098_s24 = smul.u32 48, %s5041_s0  ;;  %v3345_v33 = vrot.slane %v3332_v62, %v5922_v26  ;;  %v3349_v35 = vrot.slane %v3332_v62, %v5936_v30  ;;  %v3353_v37 = vrot.slane %v3332_v62, %v6046_v24  ;;  %v3357_v38 = vrot.slane %v3332_v62, %v6049_v25  ;;  %s3423_s2 = scalar_lea.sflag [#allocation3], %s5041_s0 }
 0x5cb   : > { %v3383_v34 = vrot.slane %v3378_v32, %v5922_v26  ;;  %v3387_v36 = vrot.slane %v3378_v32, %v5936_v30  ;;  %v3391_v63 = vrot.slane %v3378_v32, %v6046_v24  ;;  %v3395_v41 = vrot.slane %v3378_v32, %v6049_v25  ;;  %s4100_s26 = smul.u32 768, %s4846_s20  ;;  %s4862_s5 = smov [#allocation5]  }
 0x5cc   : > { %v3361_v42 = vrot.slane %v3332_v62, %v6056_v48  ;;  %v3365_v0 = vrot.slane %v3332_v62, %v6059_v50  ;;  %v3399_v40 = vrot.slane %v3378_v32, %v6056_v48  ;;  %v3403_v45 = vrot.slane %v3378_v32, %v6059_v50  ;;  %s456_s4 = scalar_lea.vmem [#allocation5], %s4098_s24  ;;  %s4774_s1 = sshll.u32 %s4862_s5, 4  ;;  %s4775_s1 = int_to_ptr.vmem [resolvable:$false] %s4774_s1 }
 0x5cd   : > { %s3449_s13 = sshll.u32 %s456_s4, 4  ;;  %s6160_s20 = scalar_lea.hbm %s6218_s9, %s4100_s26  ;;  %s6162_s13 = int_to_ptr.vmem [resolvable:$true] %s3449_s13 }
 0x5ce   : > { %s4770_s15 = scalar_lea.vmem %s6162_s13, 768  ;;  %s4776_s3 = scalar_lea.vmem %s4775_s1, 1536 }
 0x5cf   : > { %p4771_p1 = scmp.ne.s32.totalorder %s6162_s13, %s4770_s15  ;;  %p4777_p5 = scmp.lt.s32.totalorder %s6162_s13, %s4775_s1 }
 0x5d0   : > { %p4778_p6 = scmp.lt.s32.totalorder %s4776_s3, %s4770_s15 }
 0x5d1   : > { %p4772_p2 = pnand %p4771_p1, %p4966_p4 }
 0x5d2   : > { %p4779_p7 = por %p4778_p6, %p4777_p5 }
 0x5d3   : > { %p4773_p3 = pneg %p4772_p2 }
 0x5d5   : > { %p4780_p9 = pnand %p4779_p7, %p4773_p3 }
 0x62f   : > { %v3330_v28 = vpop.xlane.xlu1 %3329 }
 0x630   : > { %v3331_v61 = vmul.f32 0.0013020834, %v3330_v28 }
 0x632   : > { %v3333_v31 = vadd.f32 1e-12, %v3331_v61 }
 0x634   : > { %4701 = vrsqrt.f32 %v3333_v31 }
 0x641   : > { %v4702_v39 = vpop.eup %4701 }
 0x642   : > { %v3335_v26 = vmul.f32 %v4702_v39, %v6065_v7  ;;  %v3336_v43 = vmul.f32 %v4702_v39, %v6067_v29  ;;  %v3337_v30 = vmul.f32 %v4702_v39, %v6069_v8  ;;  %v3338_v44 = vmul.f32 %v4702_v39, %v6071_v10 }
 0x643   : > { %v3339_v24 = vmul.f32 %v4702_v39, %v6077_v13  ;;  %v3340_v25 = vmul.f32 %v4702_v39, %v6081_v16 }
 0x644   : > { %v3372_v46 = vmul.f32 %v3345_v33, %v3335_v26  ;;  %v3373_v47 = vmul.f32 %v3349_v35, %v3336_v43  ;;  %v3374_v51 = vmul.f32 %v3353_v37, %v3337_v30  ;;  %v3375_v52 = vmul.f32 %v3357_v38, %v3338_v44 }
 0x645   : > { %v3376_v53 = vmul.f32 %v3361_v42, %v3339_v24  ;;  %v3377_v54 = vmul.f32 %v3365_v0, %v3340_v25 }
 0x646   : > { %v3410_v55 = vadd.f32 %v3383_v34, %v3372_v46  ;;  %v3411_v56 = vadd.f32 %v3387_v36, %v3373_v47  ;;  %v3412_v48 = vadd.f32 %v3391_v63, %v3374_v51  ;;  %v3413_v57 = vadd.f32 %v3395_v41, %v3375_v52 }
 0x647   : > { %v3414_v50 = vadd.f32 %v3399_v40, %v3376_v53  ;;  %v3415_v58 = vadd.f32 %v3403_v45, %v3377_v54 }
 0x648   : > { %3416 = vst [vmem:[%s456_s4] sm:$0xff] %v3410_v55  ;;  %3417 = vst [vmem:[%s456_s4 + $0x8] sm:$0xff] %v3411_v56 }
 0x649   : > { %3418 = vst [vmem:[%s456_s4 + $0x10] sm:$0xff] %v3412_v48  ;;  %3419 = vst [vmem:[%s456_s4 + $0x18] sm:$0xff] %v3413_v57 }
 0x64a   : > { %3420 = vst [vmem:[%s456_s4 + $0x20] sm:$0xff] %v3414_v50  ;;  %3421 = vst [vmem:[%s456_s4 + $0x28] sm:$0xff] %v3415_v58 }
 0x64b   : > { %4783 = shalt.err (!%p4780_p9)
}
 0x64c   : > { %s4784_s14 = scalar_lea.hbm %s6160_s20, 768  ;;  %s4788_s12 = scalar_lea.hbm %s6218_s9, 1536 }
 0x64d   : > { %p4785_p12 = scmp.ne.s32.totalorder %s6160_s20, %s4784_s14  ;;  %p4789_p13 = scmp.lt.s32.totalorder %s6160_s20, %s6218_s9 }
 0x64e   : > { %p4790_p0 = scmp.lt.s32.totalorder %s4788_s12, %s4784_s14 }
 0x64f   : > { %p4786_p10 = pnand %p4785_p12, %p4966_p4 }
 0x650   : > { %p4791_p1 = por %p4790_p0, %p4789_p13 }
 0x651   : > { %p4787_p11 = pneg %p4786_p10 }
 0x653   : > { %p4792_p2 = pnand %p4791_p1, %p4787_p11 }
 0x655   : > { %4795 = shalt.err (!%p4792_p2)
}
 0x656   : > { %4105 = dma.vmem_to_hbm [thread:$0]  (%p4966_p4), %s6162_s13, 768, %s6160_s20, %s3423_s2  }
 0x657 PF: > { %p4127_p3 = scmp.ge.s32.totalorder %s4854_s22, 2  ;;  %s3489_s4 = sand.u32 1, %s4834_s17  }
 0x658   : > { %s3490_s16 = scalar_lea.sflag [#allocation3], %s3489_s4 }
 0x659   : > { %p4116_p5 = pnand %p4127_p3, %p4975_p8 }
 0x65b   : > { %p4117_p6 = pneg %p4116_p5 }
 0x65d   : > { %4825 = dma.done.wait (%p4117_p6), %s3490_s16, 768  }
 0x65e   : > { %4827 = vsyncadd (%p4117_p6), %s3490_s16, 4294966528  ;;  %s6239_s28 = sadd.s32 4294967294, %s4854_s22  }
 0x65f   : > { %s3498_s15 = sand.u32 1, %s6239_s28  }
 0x660   : > { %s3499_s5 = scalar_lea.sflag [#allocation7], %s3498_s15 }
 0x661   : > { %4829 = dma.done.wait (%p4117_p6), %s3499_s5, 128  }
 0x662   : > { %4831 = vsyncadd (%p4117_p6), %s3499_s5, 4294967168  ;;  %s29_s22 = sadd.s32 1, %s4854_s22   ;;  %s6240_s17 = smov %s4838_s18 }
 0x663   : > { %p26_p4 = scmp.ge.s32.totalorder %s29_s22, 4   ;;  %s6241_s18 = smov %s4842_s19 }
 0x664   : > { %s6242_s19 = smov %s4981_s30  ;;  %s6243_s20 = smov %s4850_s21 }
 0x665   : > { %s6244_s21 = smov %s6246_s25  ;;  %28 = sbr.rel (!%p26_p4) target bundleno = 14 (0xe), region = 140 }
 0x66a   :  { %3513 = vsyncpa [#allocation3], 1 }
 0x66b   :  { %3515 = vsyncpa [#allocation3 + $0x1], 1 }
 0x66c   :  { %3516 = vsyncpa [#allocation7], 1 }
 0x66d   :  { %3518 = vsyncpa [#allocation7 + $0x1], 1 }
 0x66e   :  { %3519 = vsyncpa [#allocation4], 1 }
 0x66f   :  { %3521 = vsyncpa [#allocation4 + $0x1], 1 }

</bundles_post_ra>
